<compile_context>
chip_gen: v6e
topology: v6e:2x2x1
jax: 0.10.0
libtpu: 0.0.40
codegen_flags: <defaults>
</compile_context>

<pallas_src>
import math

import jax
import jax.numpy as jnp
from jax import lax
from jax.experimental import pallas as pl
from jax.experimental.pallas import tpu as pltpu

HIDDEN_DIM = 32
NUM_HEADS = 8
NUM_ANGLES = 4
NUM_BINS = 50
NUM_ROTAMERS = 50
MAX_ATOMS = 14
LN_EPS = 1e-5

OUT_LANES = 128                                  # packed, lane-dense output slab
_A_OFF = 0
_U_OFF = NUM_ANGLES
_R_OFF = 2 * NUM_ANGLES
_USED_LANES = 2 * NUM_ANGLES + NUM_ROTAMERS      # 58


def sidechain_kernel(
    # inputs
    hidden_ref,
    in_w_ref, in_b_ref, out_w_ref, out_b_ref, ln_g_ref, ln_b_ref,
    f_w1_ref, f_b1_ref,
    a_w2_ref, a_b2_ref, a_w3_ref, a_b3_ref,
    u_w2_ref, u_b2_ref,
    r_w2_ref, r_b2_ref,
    centers_ref,
    # outputs
    out_ref,
):
    TB, L, D = hidden_ref.shape
    H = NUM_HEADS
    dh = D // H
    N = TB * L
    scale = 1.0 / math.sqrt(dh)

    # Flatten the TB-sequence tile: every dense layer sees M = TB*L rows.
    x = hidden_ref[...].reshape(N, D)

    # ---- multi-head self-attention (eval semantics, dropout is a no-op) ----
    qkv = jnp.dot(x, in_w_ref[...], preferred_element_type=jnp.float32) + in_b_ref[...]
    q = qkv[:, :D]
    k = qkv[:, D:2 * D]
    v = qkv[:, 2 * D:]

    o_heads = []
    for h in range(H):                           # static unroll, H = 8
        lo, hi = h * dh, (h + 1) * dh
        qh = q[:, lo:hi].reshape(TB, L, dh)
        kh = k[:, lo:hi].reshape(TB, L, dh)
        vh = v[:, lo:hi].reshape(TB, L, dh)
        s = jnp.einsum('bqd,bkd->bqk', qh, kh,
                       preferred_element_type=jnp.float32) * scale
        s = s - jnp.max(s, axis=-1, keepdims=True)
        e = jnp.exp(s)
        p = e * pl.reciprocal(jnp.sum(e, axis=-1, keepdims=True), approx=True)
        oh = jnp.einsum('bqk,bkd->bqd', p, vh,
                        preferred_element_type=jnp.float32)
        o_heads.append(oh.reshape(N, dh))
    o = jnp.concatenate(o_heads, axis=-1)        # (N, D)

    attn = jnp.dot(o, out_w_ref[...], preferred_element_type=jnp.float32) + out_b_ref[...]

    # ---- residual + LayerNorm ----
    hres = x + attn
    mu = jnp.mean(hres, axis=-1, keepdims=True)
    var = jnp.mean(jnp.square(hres - mu), axis=-1, keepdims=True)
    hn = (hres - mu) * lax.rsqrt(var + LN_EPS) * ln_g_ref[...] + ln_b_ref[...]

    # ---- fused first layers of the three heads: one [D, 2.5D] matmul ----
    f1 = jnp.maximum(
        jnp.dot(hn, f_w1_ref[...], preferred_element_type=jnp.float32) + f_b1_ref[...],
        0.0)
    a1 = f1[:, :D]
    u1 = f1[:, D:D + D // 2]
    r1 = f1[:, D + D // 2:]

    # ---- angle head: MLP -> softmax-over-bins expectation ----
    a2 = jnp.maximum(
        jnp.dot(a1, a_w2_ref[...], preferred_element_type=jnp.float32) + a_b2_ref[...],
        0.0)
    logits = jnp.dot(a2, a_w3_ref[...], preferred_element_type=jnp.float32) + a_b3_ref[...]
    logits = logits.reshape(N, NUM_ANGLES, NUM_BINS)
    lm = jnp.max(logits, axis=-1, keepdims=True)
    eb = jnp.exp(logits - lm)
    centers = centers_ref[...].reshape(1, 1, NUM_BINS)
    numer = jnp.sum(eb * centers, axis=-1)
    denom = jnp.sum(eb, axis=-1)
    angles = numer * pl.reciprocal(denom, approx=True)        # (N, NUM_ANGLES)

    # ---- uncertainty head: MLP -> sigmoid ----
    u2 = jnp.dot(u1, u_w2_ref[...], preferred_element_type=jnp.float32) + u_b2_ref[...]
    unc = pl.reciprocal(1.0 + jnp.exp(-u2), approx=True)       # (N, NUM_ANGLES)

    # ---- rotamer head ----
    rot = jnp.dot(r1, r_w2_ref[...], preferred_element_type=jnp.float32) + r_b2_ref[...]

    # ---- pack everything into one lane-dense slab ----
    pad = jnp.zeros((N, OUT_LANES - _USED_LANES), jnp.float32)
    slab = jnp.concatenate([angles, unc, rot, pad], axis=-1)   # (N, 128)
    out_ref[...] = slab.reshape(TB, L, OUT_LANES)


def _const_spec(shape):
    nd = len(shape)
    return pl.BlockSpec(tuple(shape), lambda i, nd=nd: (0,) * nd)


def init_params(key, hidden_dim=HIDDEN_DIM):
    """Parameters in PyTorch layout ([out_features, in_features] weights)."""
    D = hidden_dim
    keys = jax.random.split(key, 9)

    def lin(k, out_f, in_f):
        w = jax.random.normal(k, (out_f, in_f), jnp.float32) / math.sqrt(in_f)
        b = jnp.zeros((1, out_f), jnp.float32)
        return w, b

    in_w, in_b = lin(keys[0], 3 * D, D)          # MHA in_proj
    out_w, out_b = lin(keys[1], D, D)            # MHA out_proj
    ln_g = jnp.ones((1, D), jnp.float32)
    ln_b = jnp.zeros((1, D), jnp.float32)
    a_w1, a_b1 = lin(keys[2], D, D)
    a_w2, a_b2 = lin(keys[3], D // 2, D)
    a_w3, a_b3 = lin(keys[4], NUM_ANGLES * NUM_BINS, D // 2)
    u_w1, u_b1 = lin(keys[5], D // 2, D)
    u_w2, u_b2 = lin(keys[6], NUM_ANGLES, D // 2)
    r_w1, r_b1 = lin(keys[7], D, D)
    r_w2, r_b2 = lin(keys[8], NUM_ROTAMERS, D)
    return [in_w, in_b, out_w, out_b, ln_g, ln_b,
            a_w1, a_b1, a_w2, a_b2, a_w3, a_b3,
            u_w1, u_b1, u_w2, u_b2,
            r_w1, r_b1, r_w2, r_b2]


def _pack_params(params):
    """Pre-transpose to [in, out], fuse the three h-consuming first layers,
    and append the angle-bin-center constant. All done outside the kernel."""
    (in_w, in_b, out_w, out_b, ln_g, ln_b,
     a_w1, a_b1, a_w2, a_b2, a_w3, a_b3,
     u_w1, u_b1, u_w2, u_b2,
     r_w1, r_b1, r_w2, r_b2) = params

    f_w1 = jnp.concatenate([a_w1.T, u_w1.T, r_w1.T], axis=1)   # [D, D + D//2 + D]
    f_b1 = jnp.concatenate([a_b1, u_b1, r_b1], axis=1)         # [1, D + D//2 + D]
    bin_width = 2.0 * math.pi / NUM_BINS
    centers = (jnp.arange(NUM_BINS, dtype=jnp.float32) * bin_width).reshape(1, NUM_BINS)

    return [in_w.T, in_b, out_w.T, out_b, ln_g, ln_b,
            f_w1, f_b1,
            a_w2.T, a_b2, a_w3.T, a_b3,
            u_w2.T, u_b2,
            r_w2.T, r_b2,
            centers]


def sidechain_forward(params, hidden, backbone_coords, residue_type, mask=None):
    B, L, D = hidden.shape
    packed = _pack_params(params)

    # Batch-tile size: make M = TB*L big enough to fill MXU rows / amortize
    # per-grid-step overhead; on v7x prefer >= 2 "parallel" grid steps when
    # that still keeps >= 128 rows per step.
    rows_target = 256
    tb = max(1, min(B, max(1, rows_target // max(L, 1))))
    if pl.cdiv(B, tb) < 2 and B >= 2 and pl.cdiv(B, 2) * L >= 128:
        tb = pl.cdiv(B, 2)
    num_tiles = pl.cdiv(B, tb)
    b_pad = num_tiles * tb

    hidden_in = hidden.astype(jnp.float32)
    if b_pad != B:
        hidden_in = jnp.pad(hidden_in, ((0, b_pad - B), (0, 0), (0, 0)))

    # TODO(synk): for very long sequences the per-head (TB, L, L) score buffers
    # grow quadratically; switch to flash-style key tiling before scaling L.
    in_specs = [pl.BlockSpec((tb, L, D), lambda i: (i, 0, 0))] + \
               [_const_spec(p.shape) for p in packed]
    out_spec = pl.BlockSpec((tb, L, OUT_LANES), lambda i: (i, 0, 0))

    slab = pl.pallas_call(
        sidechain_kernel,
        out_shape=jax.ShapeDtypeStruct((b_pad, L, OUT_LANES), jnp.float32),
        grid=(num_tiles,),
        in_specs=in_specs,
        out_specs=out_spec,
        compiler_params=pltpu.CompilerParams(dimension_semantics=("parallel",)),
    )(hidden_in, *packed)

    angles = slab[:B, :, _A_OFF:_A_OFF + NUM_ANGLES]
    uncertainties = slab[:B, :, _U_OFF:_U_OFF + NUM_ANGLES]
    rotamers = slab[:B, :, _R_OFF:_R_OFF + NUM_ROTAMERS]

    # CB placement + coordinate assembly: depends only on backbone_coords,
    # trivially elementwise -> plain-JAX glue (no lane-width-3 kernel traffic).
    bb = backbone_coords.astype(jnp.float32)
    n_xyz = bb[:, :, 0, :]
    ca_xyz = bb[:, :, 1, :]
    c_xyz = bb[:, :, 2, :]
    d = n_xyz - c_xyz
    nrm = jnp.sqrt(jnp.sum(d * d, axis=-1, keepdims=True))
    cb = ca_xyz + 1.5 * d / jnp.maximum(nrm, 1e-12)
    coordinates = jnp.concatenate(
        [bb, cb[:, :, None, :], jnp.zeros((B, L, MAX_ATOMS - 4, 3), jnp.float32)],
        axis=2)

    # chi_mask: in the reference, int residue indices never equal the string
    # keys of MAX_CHI_ANGLES, so the mask is all-False and no template branch
    # runs.
    # TODO(synk): lookup-table chi_mask + template rotations if residue_type
    # were meant as string labels.
    chi_mask = jnp.zeros((B, L, NUM_ANGLES), dtype=bool)

    if mask is not None:
        m = mask.astype(jnp.float32)
        angles = angles * m[..., None]
        uncertainties = uncertainties * m[..., None]
        rotamers = rotamers * m[..., None]
        coordinates = coordinates * m[..., None, None]

    return {
        'angles': angles,
        'coordinates': coordinates,
        'uncertainties': uncertainties,
        'rotamers': rotamers,
        'chi_mask': chi_mask,
    }


if __name__ == "__main__":
    key = jax.random.PRNGKey(0)
    k1, k2, k3, k4 = jax.random.split(key, 4)

    B, L, D = 2, 8, HIDDEN_DIM
    hidden = jax.random.normal(k1, (B, L, D), jnp.float32)
    backbone_coords = jax.random.normal(k2, (B, L, 3, 3), jnp.float32)
    residue_type = jax.random.randint(k3, (B, L), 0, 19)
    mask = (jax.random.uniform(k4, (B, L)) > 0.2).astype(jnp.float32)

    params = init_params(jax.random.PRNGKey(42))

    out = sidechain_forward(params, hidden, backbone_coords, residue_type, mask)
    jax.block_until_ready(out)

    assert out['angles'].shape == (B, L, NUM_ANGLES)
    assert out['coordinates'].shape == (B, L, MAX_ATOMS, 3)
    assert out['uncertainties'].shape == (B, L, NUM_ANGLES)
    assert out['rotamers'].shape == (B, L, NUM_ROTAMERS)
    assert out['chi_mask'].shape == (B, L, NUM_ANGLES)
    print("KERNEL_OK")
</pallas_src>

<mosaic_0001>
module attributes {stable_mosaic.version = 11 : i64} {
  func.func @sidechain_kernel(%arg0: i32, %arg1: memref<2x8x32xf32, #tpu.memory_space<vmem>>, %arg2: memref<32x96xf32, #tpu.memory_space<vmem>>, %arg3: memref<1x96xf32, #tpu.memory_space<vmem>>, %arg4: memref<32x32xf32, #tpu.memory_space<vmem>>, %arg5: memref<1x32xf32, #tpu.memory_space<vmem>>, %arg6: memref<1x32xf32, #tpu.memory_space<vmem>>, %arg7: memref<1x32xf32, #tpu.memory_space<vmem>>, %arg8: memref<32x80xf32, #tpu.memory_space<vmem>>, %arg9: memref<1x80xf32, #tpu.memory_space<vmem>>, %arg10: memref<32x16xf32, #tpu.memory_space<vmem>>, %arg11: memref<1x16xf32, #tpu.memory_space<vmem>>, %arg12: memref<16x200xf32, #tpu.memory_space<vmem>>, %arg13: memref<1x200xf32, #tpu.memory_space<vmem>>, %arg14: memref<16x4xf32, #tpu.memory_space<vmem>>, %arg15: memref<1x4xf32, #tpu.memory_space<vmem>>, %arg16: memref<32x50xf32, #tpu.memory_space<vmem>>, %arg17: memref<1x50xf32, #tpu.memory_space<vmem>>, %arg18: memref<1x50xf32, #tpu.memory_space<vmem>>, %arg19: memref<2x8x128xf32, #tpu.memory_space<vmem>>) attributes {dimension_semantics = [#tpu.dimension_semantics<parallel>], iteration_bounds = array<i64: 1>, scalar_prefetch = 0 : i64, scratch_operands = 0 : i64, tpu.core_type = #tpu.core_type<tc>, window_params = [{transform_indices = @transform_0, window_bounds = array<i64: 2, 8, 32>}, {pipeline_mode = #tpu.pipeline_mode<synchronous>, transform_indices = @transform_1, window_bounds = array<i64: 32, 96>}, {pipeline_mode = #tpu.pipeline_mode<synchronous>, transform_indices = @transform_2, window_bounds = array<i64: 1, 96>}, {pipeline_mode = #tpu.pipeline_mode<synchronous>, transform_indices = @transform_3, window_bounds = array<i64: 32, 32>}, {pipeline_mode = #tpu.pipeline_mode<synchronous>, transform_indices = @transform_4, window_bounds = array<i64: 1, 32>}, {pipeline_mode = #tpu.pipeline_mode<synchronous>, transform_indices = @transform_5, window_bounds = array<i64: 1, 32>}, {pipeline_mode = #tpu.pipeline_mode<synchronous>, transform_indices = @transform_6, window_bounds = array<i64: 1, 32>}, {pipeline_mode = #tpu.pipeline_mode<synchronous>, transform_indices = @transform_7, window_bounds = array<i64: 32, 80>}, {pipeline_mode = #tpu.pipeline_mode<synchronous>, transform_indices = @transform_8, window_bounds = array<i64: 1, 80>}, {pipeline_mode = #tpu.pipeline_mode<synchronous>, transform_indices = @transform_9, window_bounds = array<i64: 32, 16>}, {pipeline_mode = #tpu.pipeline_mode<synchronous>, transform_indices = @transform_10, window_bounds = array<i64: 1, 16>}, {pipeline_mode = #tpu.pipeline_mode<synchronous>, transform_indices = @transform_11, window_bounds = array<i64: 16, 200>}, {pipeline_mode = #tpu.pipeline_mode<synchronous>, transform_indices = @transform_12, window_bounds = array<i64: 1, 200>}, {pipeline_mode = #tpu.pipeline_mode<synchronous>, transform_indices = @transform_13, window_bounds = array<i64: 16, 4>}, {pipeline_mode = #tpu.pipeline_mode<synchronous>, transform_indices = @transform_14, window_bounds = array<i64: 1, 4>}, {pipeline_mode = #tpu.pipeline_mode<synchronous>, transform_indices = @transform_15, window_bounds = array<i64: 32, 50>}, {pipeline_mode = #tpu.pipeline_mode<synchronous>, transform_indices = @transform_16, window_bounds = array<i64: 1, 50>}, {pipeline_mode = #tpu.pipeline_mode<synchronous>, transform_indices = @transform_17, window_bounds = array<i64: 1, 50>}, {transform_indices = @transform_18, window_bounds = array<i64: 2, 8, 128>}]} {
    %c0 = arith.constant 0 : index
    %c0_0 = arith.constant 0 : index
    %c0_1 = arith.constant 0 : index
    %0 = vector.load %arg1[%c0, %c0_0, %c0_1] : memref<2x8x32xf32, #tpu.memory_space<vmem>>, vector<2x8x32xf32>
    %1 = vector.shape_cast %0 : vector<2x8x32xf32> to vector<16x32xf32>
    %c0_2 = arith.constant 0 : index
    %c0_3 = arith.constant 0 : index
    %2 = vector.load %arg2[%c0_2, %c0_3] : memref<32x96xf32, #tpu.memory_space<vmem>>, vector<32x96xf32>
    %cst = arith.constant dense<0.000000e+00> : vector<16x96xf32>
    %3 = tpu.matmul %1, %2, %cst {dimension_numbers = #tpu.dot_dimension_numbers<[1], [0], [0], [1], [0, 0, 1, 1], [], []>} : vector<16x32xf32>, vector<32x96xf32>, vector<16x96xf32> -> vector<16x96xf32>
    %c0_4 = arith.constant 0 : index
    %c0_5 = arith.constant 0 : index
    %4 = vector.load %arg3[%c0_4, %c0_5] : memref<1x96xf32, #tpu.memory_space<vmem>>, vector<1x96xf32>
    %5 = vector.broadcast %4 : vector<1x96xf32> to vector<16x96xf32>
    %6 = arith.addf %3, %5 : vector<16x96xf32>
    %7 = vector.extract_strided_slice %6 {offsets = [0, 0], sizes = [16, 32], strides = [1, 1]} : vector<16x96xf32> to vector<16x32xf32>
    %8 = vector.extract_strided_slice %6 {offsets = [0, 32], sizes = [16, 32], strides = [1, 1]} : vector<16x96xf32> to vector<16x32xf32>
    %9 = vector.extract_strided_slice %6 {offsets = [0, 64], sizes = [16, 32], strides = [1, 1]} : vector<16x96xf32> to vector<16x32xf32>
    %10 = vector.extract_strided_slice %7 {offsets = [0, 0], sizes = [16, 4], strides = [1, 1]} : vector<16x32xf32> to vector<16x4xf32>
    %11 = vector.shape_cast %10 : vector<16x4xf32> to vector<2x8x4xf32>
    %12 = vector.extract_strided_slice %8 {offsets = [0, 0], sizes = [16, 4], strides = [1, 1]} : vector<16x32xf32> to vector<16x4xf32>
    %13 = vector.shape_cast %12 : vector<16x4xf32> to vector<2x8x4xf32>
    %14 = vector.extract_strided_slice %9 {offsets = [0, 0], sizes = [16, 4], strides = [1, 1]} : vector<16x32xf32> to vector<16x4xf32>
    %15 = vector.shape_cast %14 : vector<16x4xf32> to vector<2x8x4xf32>
    "tpu.trace_start"() <{level = 10 : i32, message = "bqd,bkd->bqk"}> : () -> ()
    %cst_6 = arith.constant dense<0.000000e+00> : vector<2x8x8xf32>
    %16 = tpu.matmul %11, %13, %cst_6 {dimension_numbers = #tpu.dot_dimension_numbers<[2], [2], [1], [1], [0, 0, 0, 1, 1, 1], [0], [0]>} : vector<2x8x4xf32>, vector<2x8x4xf32>, vector<2x8x8xf32> -> vector<2x8x8xf32>
    "tpu.trace_stop"() : () -> ()
    %cst_7 = arith.constant 5.000000e-01 : f32
    %17 = vector.broadcast %cst_7 : f32 to vector<2x8x8xf32>
    %18 = arith.mulf %16, %17 : vector<2x8x8xf32>
    %cst_8 = arith.constant dense<0xFF800000> : vector<2x8xf32>
    %19 = vector.multi_reduction <maximumf>, %18, %cst_8 [2] : vector<2x8x8xf32> to vector<2x8xf32>
    %20 = vector.shape_cast %19 : vector<2x8xf32> to vector<2x8x1xf32>
    %21 = vector.broadcast %20 : vector<2x8x1xf32> to vector<2x8x8xf32>
    %22 = arith.subf %18, %21 : vector<2x8x8xf32>
    %23 = math.exp %22 : vector<2x8x8xf32>
    %cst_9 = arith.constant dense<0.000000e+00> : vector<2x8xf32>
    %24 = vector.multi_reduction <add>, %23, %cst_9 [2] : vector<2x8x8xf32> to vector<2x8xf32>
    %25 = vector.shape_cast %24 : vector<2x8xf32> to vector<2x8x1xf32>
    %26 = tpu.reciprocal %25 {approx = true} : vector<2x8x1xf32> -> vector<2x8x1xf32>
    %27 = vector.broadcast %26 : vector<2x8x1xf32> to vector<2x8x8xf32>
    %28 = arith.mulf %23, %27 : vector<2x8x8xf32>
    "tpu.trace_start"() <{level = 10 : i32, message = "bqk,bkd->bqd"}> : () -> ()
    %cst_10 = arith.constant dense<0.000000e+00> : vector<2x8x4xf32>
    %29 = tpu.matmul %28, %15, %cst_10 {dimension_numbers = #tpu.dot_dimension_numbers<[2], [1], [1], [2], [0, 0, 0, 1, 1, 2], [0], [0]>} : vector<2x8x8xf32>, vector<2x8x4xf32>, vector<2x8x4xf32> -> vector<2x8x4xf32>
    "tpu.trace_stop"() : () -> ()
    %30 = vector.shape_cast %29 : vector<2x8x4xf32> to vector<16x4xf32>
    %31 = vector.extract_strided_slice %7 {offsets = [0, 4], sizes = [16, 4], strides = [1, 1]} : vector<16x32xf32> to vector<16x4xf32>
    %32 = vector.shape_cast %31 : vector<16x4xf32> to vector<2x8x4xf32>
    %33 = vector.extract_strided_slice %8 {offsets = [0, 4], sizes = [16, 4], strides = [1, 1]} : vector<16x32xf32> to vector<16x4xf32>
    %34 = vector.shape_cast %33 : vector<16x4xf32> to vector<2x8x4xf32>
    %35 = vector.extract_strided_slice %9 {offsets = [0, 4], sizes = [16, 4], strides = [1, 1]} : vector<16x32xf32> to vector<16x4xf32>
    %36 = vector.shape_cast %35 : vector<16x4xf32> to vector<2x8x4xf32>
    "tpu.trace_start"() <{level = 10 : i32, message = "bqd,bkd->bqk"}> : () -> ()
    %cst_11 = arith.constant dense<0.000000e+00> : vector<2x8x8xf32>
    %37 = tpu.matmul %32, %34, %cst_11 {dimension_numbers = #tpu.dot_dimension_numbers<[2], [2], [1], [1], [0, 0, 0, 1, 1, 1], [0], [0]>} : vector<2x8x4xf32>, vector<2x8x4xf32>, vector<2x8x8xf32> -> vector<2x8x8xf32>
    "tpu.trace_stop"() : () -> ()
    %cst_12 = arith.constant 5.000000e-01 : f32
    %38 = vector.broadcast %cst_12 : f32 to vector<2x8x8xf32>
    %39 = arith.mulf %37, %38 : vector<2x8x8xf32>
    %cst_13 = arith.constant dense<0xFF800000> : vector<2x8xf32>
    %40 = vector.multi_reduction <maximumf>, %39, %cst_13 [2] : vector<2x8x8xf32> to vector<2x8xf32>
    %41 = vector.shape_cast %40 : vector<2x8xf32> to vector<2x8x1xf32>
    %42 = vector.broadcast %41 : vector<2x8x1xf32> to vector<2x8x8xf32>
    %43 = arith.subf %39, %42 : vector<2x8x8xf32>
    %44 = math.exp %43 : vector<2x8x8xf32>
    %cst_14 = arith.constant dense<0.000000e+00> : vector<2x8xf32>
    %45 = vector.multi_reduction <add>, %44, %cst_14 [2] : vector<2x8x8xf32> to vector<2x8xf32>
    %46 = vector.shape_cast %45 : vector<2x8xf32> to vector<2x8x1xf32>
    %47 = tpu.reciprocal %46 {approx = true} : vector<2x8x1xf32> -> vector<2x8x1xf32>
    %48 = vector.broadcast %47 : vector<2x8x1xf32> to vector<2x8x8xf32>
    %49 = arith.mulf %44, %48 : vector<2x8x8xf32>
    "tpu.trace_start"() <{level = 10 : i32, message = "bqk,bkd->bqd"}> : () -> ()
    %cst_15 = arith.constant dense<0.000000e+00> : vector<2x8x4xf32>
    %50 = tpu.matmul %49, %36, %cst_15 {dimension_numbers = #tpu.dot_dimension_numbers<[2], [1], [1], [2], [0, 0, 0, 1, 1, 2], [0], [0]>} : vector<2x8x8xf32>, vector<2x8x4xf32>, vector<2x8x4xf32> -> vector<2x8x4xf32>
    "tpu.trace_stop"() : () -> ()
    %51 = vector.shape_cast %50 : vector<2x8x4xf32> to vector<16x4xf32>
    %52 = vector.extract_strided_slice %7 {offsets = [0, 8], sizes = [16, 4], strides = [1, 1]} : vector<16x32xf32> to vector<16x4xf32>
    %53 = vector.shape_cast %52 : vector<16x4xf32> to vector<2x8x4xf32>
    %54 = vector.extract_strided_slice %8 {offsets = [0, 8], sizes = [16, 4], strides = [1, 1]} : vector<16x32xf32> to vector<16x4xf32>
    %55 = vector.shape_cast %54 : vector<16x4xf32> to vector<2x8x4xf32>
    %56 = vector.extract_strided_slice %9 {offsets = [0, 8], sizes = [16, 4], strides = [1, 1]} : vector<16x32xf32> to vector<16x4xf32>
    %57 = vector.shape_cast %56 : vector<16x4xf32> to vector<2x8x4xf32>
    "tpu.trace_start"() <{level = 10 : i32, message = "bqd,bkd->bqk"}> : () -> ()
    %cst_16 = arith.constant dense<0.000000e+00> : vector<2x8x8xf32>
    %58 = tpu.matmul %53, %55, %cst_16 {dimension_numbers = #tpu.dot_dimension_numbers<[2], [2], [1], [1], [0, 0, 0, 1, 1, 1], [0], [0]>} : vector<2x8x4xf32>, vector<2x8x4xf32>, vector<2x8x8xf32> -> vector<2x8x8xf32>
    "tpu.trace_stop"() : () -> ()
    %cst_17 = arith.constant 5.000000e-01 : f32
    %59 = vector.broadcast %cst_17 : f32 to vector<2x8x8xf32>
    %60 = arith.mulf %58, %59 : vector<2x8x8xf32>
    %cst_18 = arith.constant dense<0xFF800000> : vector<2x8xf32>
    %61 = vector.multi_reduction <maximumf>, %60, %cst_18 [2] : vector<2x8x8xf32> to vector<2x8xf32>
    %62 = vector.shape_cast %61 : vector<2x8xf32> to vector<2x8x1xf32>
    %63 = vector.broadcast %62 : vector<2x8x1xf32> to vector<2x8x8xf32>
    %64 = arith.subf %60, %63 : vector<2x8x8xf32>
    %65 = math.exp %64 : vector<2x8x8xf32>
    %cst_19 = arith.constant dense<0.000000e+00> : vector<2x8xf32>
    %66 = vector.multi_reduction <add>, %65, %cst_19 [2] : vector<2x8x8xf32> to vector<2x8xf32>
    %67 = vector.shape_cast %66 : vector<2x8xf32> to vector<2x8x1xf32>
    %68 = tpu.reciprocal %67 {approx = true} : vector<2x8x1xf32> -> vector<2x8x1xf32>
    %69 = vector.broadcast %68 : vector<2x8x1xf32> to vector<2x8x8xf32>
    %70 = arith.mulf %65, %69 : vector<2x8x8xf32>
    "tpu.trace_start"() <{level = 10 : i32, message = "bqk,bkd->bqd"}> : () -> ()
    %cst_20 = arith.constant dense<0.000000e+00> : vector<2x8x4xf32>
    %71 = tpu.matmul %70, %57, %cst_20 {dimension_numbers = #tpu.dot_dimension_numbers<[2], [1], [1], [2], [0, 0, 0, 1, 1, 2], [0], [0]>} : vector<2x8x8xf32>, vector<2x8x4xf32>, vector<2x8x4xf32> -> vector<2x8x4xf32>
    "tpu.trace_stop"() : () -> ()
    %72 = vector.shape_cast %71 : vector<2x8x4xf32> to vector<16x4xf32>
    %73 = vector.extract_strided_slice %7 {offsets = [0, 12], sizes = [16, 4], strides = [1, 1]} : vector<16x32xf32> to vector<16x4xf32>
    %74 = vector.shape_cast %73 : vector<16x4xf32> to vector<2x8x4xf32>
    %75 = vector.extract_strided_slice %8 {offsets = [0, 12], sizes = [16, 4], strides = [1, 1]} : vector<16x32xf32> to vector<16x4xf32>
    %76 = vector.shape_cast %75 : vector<16x4xf32> to vector<2x8x4xf32>
    %77 = vector.extract_strided_slice %9 {offsets = [0, 12], sizes = [16, 4], strides = [1, 1]} : vector<16x32xf32> to vector<16x4xf32>
    %78 = vector.shape_cast %77 : vector<16x4xf32> to vector<2x8x4xf32>
    "tpu.trace_start"() <{level = 10 : i32, message = "bqd,bkd->bqk"}> : () -> ()
    %cst_21 = arith.constant dense<0.000000e+00> : vector<2x8x8xf32>
    %79 = tpu.matmul %74, %76, %cst_21 {dimension_numbers = #tpu.dot_dimension_numbers<[2], [2], [1], [1], [0, 0, 0, 1, 1, 1], [0], [0]>} : vector<2x8x4xf32>, vector<2x8x4xf32>, vector<2x8x8xf32> -> vector<2x8x8xf32>
    "tpu.trace_stop"() : () -> ()
    %cst_22 = arith.constant 5.000000e-01 : f32
    %80 = vector.broadcast %cst_22 : f32 to vector<2x8x8xf32>
    %81 = arith.mulf %79, %80 : vector<2x8x8xf32>
    %cst_23 = arith.constant dense<0xFF800000> : vector<2x8xf32>
    %82 = vector.multi_reduction <maximumf>, %81, %cst_23 [2] : vector<2x8x8xf32> to vector<2x8xf32>
    %83 = vector.shape_cast %82 : vector<2x8xf32> to vector<2x8x1xf32>
    %84 = vector.broadcast %83 : vector<2x8x1xf32> to vector<2x8x8xf32>
    %85 = arith.subf %81, %84 : vector<2x8x8xf32>
    %86 = math.exp %85 : vector<2x8x8xf32>
    %cst_24 = arith.constant dense<0.000000e+00> : vector<2x8xf32>
    %87 = vector.multi_reduction <add>, %86, %cst_24 [2] : vector<2x8x8xf32> to vector<2x8xf32>
    %88 = vector.shape_cast %87 : vector<2x8xf32> to vector<2x8x1xf32>
    %89 = tpu.reciprocal %88 {approx = true} : vector<2x8x1xf32> -> vector<2x8x1xf32>
    %90 = vector.broadcast %89 : vector<2x8x1xf32> to vector<2x8x8xf32>
    %91 = arith.mulf %86, %90 : vector<2x8x8xf32>
    "tpu.trace_start"() <{level = 10 : i32, message = "bqk,bkd->bqd"}> : () -> ()
    %cst_25 = arith.constant dense<0.000000e+00> : vector<2x8x4xf32>
    %92 = tpu.matmul %91, %78, %cst_25 {dimension_numbers = #tpu.dot_dimension_numbers<[2], [1], [1], [2], [0, 0, 0, 1, 1, 2], [0], [0]>} : vector<2x8x8xf32>, vector<2x8x4xf32>, vector<2x8x4xf32> -> vector<2x8x4xf32>
    "tpu.trace_stop"() : () -> ()
    %93 = vector.shape_cast %92 : vector<2x8x4xf32> to vector<16x4xf32>
    %94 = vector.extract_strided_slice %7 {offsets = [0, 16], sizes = [16, 4], strides = [1, 1]} : vector<16x32xf32> to vector<16x4xf32>
    %95 = vector.shape_cast %94 : vector<16x4xf32> to vector<2x8x4xf32>
    %96 = vector.extract_strided_slice %8 {offsets = [0, 16], sizes = [16, 4], strides = [1, 1]} : vector<16x32xf32> to vector<16x4xf32>
    %97 = vector.shape_cast %96 : vector<16x4xf32> to vector<2x8x4xf32>
    %98 = vector.extract_strided_slice %9 {offsets = [0, 16], sizes = [16, 4], strides = [1, 1]} : vector<16x32xf32> to vector<16x4xf32>
    %99 = vector.shape_cast %98 : vector<16x4xf32> to vector<2x8x4xf32>
    "tpu.trace_start"() <{level = 10 : i32, message = "bqd,bkd->bqk"}> : () -> ()
    %cst_26 = arith.constant dense<0.000000e+00> : vector<2x8x8xf32>
    %100 = tpu.matmul %95, %97, %cst_26 {dimension_numbers = #tpu.dot_dimension_numbers<[2], [2], [1], [1], [0, 0, 0, 1, 1, 1], [0], [0]>} : vector<2x8x4xf32>, vector<2x8x4xf32>, vector<2x8x8xf32> -> vector<2x8x8xf32>
    "tpu.trace_stop"() : () -> ()
    %cst_27 = arith.constant 5.000000e-01 : f32
    %101 = vector.broadcast %cst_27 : f32 to vector<2x8x8xf32>
    %102 = arith.mulf %100, %101 : vector<2x8x8xf32>
    %cst_28 = arith.constant dense<0xFF800000> : vector<2x8xf32>
    %103 = vector.multi_reduction <maximumf>, %102, %cst_28 [2] : vector<2x8x8xf32> to vector<2x8xf32>
    %104 = vector.shape_cast %103 : vector<2x8xf32> to vector<2x8x1xf32>
    %105 = vector.broadcast %104 : vector<2x8x1xf32> to vector<2x8x8xf32>
    %106 = arith.subf %102, %105 : vector<2x8x8xf32>
    %107 = math.exp %106 : vector<2x8x8xf32>
    %cst_29 = arith.constant dense<0.000000e+00> : vector<2x8xf32>
    %108 = vector.multi_reduction <add>, %107, %cst_29 [2] : vector<2x8x8xf32> to vector<2x8xf32>
    %109 = vector.shape_cast %108 : vector<2x8xf32> to vector<2x8x1xf32>
    %110 = tpu.reciprocal %109 {approx = true} : vector<2x8x1xf32> -> vector<2x8x1xf32>
    %111 = vector.broadcast %110 : vector<2x8x1xf32> to vector<2x8x8xf32>
    %112 = arith.mulf %107, %111 : vector<2x8x8xf32>
    "tpu.trace_start"() <{level = 10 : i32, message = "bqk,bkd->bqd"}> : () -> ()
    %cst_30 = arith.constant dense<0.000000e+00> : vector<2x8x4xf32>
    %113 = tpu.matmul %112, %99, %cst_30 {dimension_numbers = #tpu.dot_dimension_numbers<[2], [1], [1], [2], [0, 0, 0, 1, 1, 2], [0], [0]>} : vector<2x8x8xf32>, vector<2x8x4xf32>, vector<2x8x4xf32> -> vector<2x8x4xf32>
    "tpu.trace_stop"() : () -> ()
    %114 = vector.shape_cast %113 : vector<2x8x4xf32> to vector<16x4xf32>
    %115 = vector.extract_strided_slice %7 {offsets = [0, 20], sizes = [16, 4], strides = [1, 1]} : vector<16x32xf32> to vector<16x4xf32>
    %116 = vector.shape_cast %115 : vector<16x4xf32> to vector<2x8x4xf32>
    %117 = vector.extract_strided_slice %8 {offsets = [0, 20], sizes = [16, 4], strides = [1, 1]} : vector<16x32xf32> to vector<16x4xf32>
    %118 = vector.shape_cast %117 : vector<16x4xf32> to vector<2x8x4xf32>
    %119 = vector.extract_strided_slice %9 {offsets = [0, 20], sizes = [16, 4], strides = [1, 1]} : vector<16x32xf32> to vector<16x4xf32>
    %120 = vector.shape_cast %119 : vector<16x4xf32> to vector<2x8x4xf32>
    "tpu.trace_start"() <{level = 10 : i32, message = "bqd,bkd->bqk"}> : () -> ()
    %cst_31 = arith.constant dense<0.000000e+00> : vector<2x8x8xf32>
    %121 = tpu.matmul %116, %118, %cst_31 {dimension_numbers = #tpu.dot_dimension_numbers<[2], [2], [1], [1], [0, 0, 0, 1, 1, 1], [0], [0]>} : vector<2x8x4xf32>, vector<2x8x4xf32>, vector<2x8x8xf32> -> vector<2x8x8xf32>
    "tpu.trace_stop"() : () -> ()
    %cst_32 = arith.constant 5.000000e-01 : f32
    %122 = vector.broadcast %cst_32 : f32 to vector<2x8x8xf32>
    %123 = arith.mulf %121, %122 : vector<2x8x8xf32>
    %cst_33 = arith.constant dense<0xFF800000> : vector<2x8xf32>
    %124 = vector.multi_reduction <maximumf>, %123, %cst_33 [2] : vector<2x8x8xf32> to vector<2x8xf32>
    %125 = vector.shape_cast %124 : vector<2x8xf32> to vector<2x8x1xf32>
    %126 = vector.broadcast %125 : vector<2x8x1xf32> to vector<2x8x8xf32>
    %127 = arith.subf %123, %126 : vector<2x8x8xf32>
    %128 = math.exp %127 : vector<2x8x8xf32>
    %cst_34 = arith.constant dense<0.000000e+00> : vector<2x8xf32>
    %129 = vector.multi_reduction <add>, %128, %cst_34 [2] : vector<2x8x8xf32> to vector<2x8xf32>
    %130 = vector.shape_cast %129 : vector<2x8xf32> to vector<2x8x1xf32>
    %131 = tpu.reciprocal %130 {approx = true} : vector<2x8x1xf32> -> vector<2x8x1xf32>
    %132 = vector.broadcast %131 : vector<2x8x1xf32> to vector<2x8x8xf32>
    %133 = arith.mulf %128, %132 : vector<2x8x8xf32>
    "tpu.trace_start"() <{level = 10 : i32, message = "bqk,bkd->bqd"}> : () -> ()
    %cst_35 = arith.constant dense<0.000000e+00> : vector<2x8x4xf32>
    %134 = tpu.matmul %133, %120, %cst_35 {dimension_numbers = #tpu.dot_dimension_numbers<[2], [1], [1], [2], [0, 0, 0, 1, 1, 2], [0], [0]>} : vector<2x8x8xf32>, vector<2x8x4xf32>, vector<2x8x4xf32> -> vector<2x8x4xf32>
    "tpu.trace_stop"() : () -> ()
    %135 = vector.shape_cast %134 : vector<2x8x4xf32> to vector<16x4xf32>
    %136 = vector.extract_strided_slice %7 {offsets = [0, 24], sizes = [16, 4], strides = [1, 1]} : vector<16x32xf32> to vector<16x4xf32>
    %137 = vector.shape_cast %136 : vector<16x4xf32> to vector<2x8x4xf32>
    %138 = vector.extract_strided_slice %8 {offsets = [0, 24], sizes = [16, 4], strides = [1, 1]} : vector<16x32xf32> to vector<16x4xf32>
    %139 = vector.shape_cast %138 : vector<16x4xf32> to vector<2x8x4xf32>
    %140 = vector.extract_strided_slice %9 {offsets = [0, 24], sizes = [16, 4], strides = [1, 1]} : vector<16x32xf32> to vector<16x4xf32>
    %141 = vector.shape_cast %140 : vector<16x4xf32> to vector<2x8x4xf32>
    "tpu.trace_start"() <{level = 10 : i32, message = "bqd,bkd->bqk"}> : () -> ()
    %cst_36 = arith.constant dense<0.000000e+00> : vector<2x8x8xf32>
    %142 = tpu.matmul %137, %139, %cst_36 {dimension_numbers = #tpu.dot_dimension_numbers<[2], [2], [1], [1], [0, 0, 0, 1, 1, 1], [0], [0]>} : vector<2x8x4xf32>, vector<2x8x4xf32>, vector<2x8x8xf32> -> vector<2x8x8xf32>
    "tpu.trace_stop"() : () -> ()
    %cst_37 = arith.constant 5.000000e-01 : f32
    %143 = vector.broadcast %cst_37 : f32 to vector<2x8x8xf32>
    %144 = arith.mulf %142, %143 : vector<2x8x8xf32>
    %cst_38 = arith.constant dense<0xFF800000> : vector<2x8xf32>
    %145 = vector.multi_reduction <maximumf>, %144, %cst_38 [2] : vector<2x8x8xf32> to vector<2x8xf32>
    %146 = vector.shape_cast %145 : vector<2x8xf32> to vector<2x8x1xf32>
    %147 = vector.broadcast %146 : vector<2x8x1xf32> to vector<2x8x8xf32>
    %148 = arith.subf %144, %147 : vector<2x8x8xf32>
    %149 = math.exp %148 : vector<2x8x8xf32>
    %cst_39 = arith.constant dense<0.000000e+00> : vector<2x8xf32>
    %150 = vector.multi_reduction <add>, %149, %cst_39 [2] : vector<2x8x8xf32> to vector<2x8xf32>
    %151 = vector.shape_cast %150 : vector<2x8xf32> to vector<2x8x1xf32>
    %152 = tpu.reciprocal %151 {approx = true} : vector<2x8x1xf32> -> vector<2x8x1xf32>
    %153 = vector.broadcast %152 : vector<2x8x1xf32> to vector<2x8x8xf32>
    %154 = arith.mulf %149, %153 : vector<2x8x8xf32>
    "tpu.trace_start"() <{level = 10 : i32, message = "bqk,bkd->bqd"}> : () -> ()
    %cst_40 = arith.constant dense<0.000000e+00> : vector<2x8x4xf32>
    %155 = tpu.matmul %154, %141, %cst_40 {dimension_numbers = #tpu.dot_dimension_numbers<[2], [1], [1], [2], [0, 0, 0, 1, 1, 2], [0], [0]>} : vector<2x8x8xf32>, vector<2x8x4xf32>, vector<2x8x4xf32> -> vector<2x8x4xf32>
    "tpu.trace_stop"() : () -> ()
    %156 = vector.shape_cast %155 : vector<2x8x4xf32> to vector<16x4xf32>
    %157 = vector.extract_strided_slice %7 {offsets = [0, 28], sizes = [16, 4], strides = [1, 1]} : vector<16x32xf32> to vector<16x4xf32>
    %158 = vector.shape_cast %157 : vector<16x4xf32> to vector<2x8x4xf32>
    %159 = vector.extract_strided_slice %8 {offsets = [0, 28], sizes = [16, 4], strides = [1, 1]} : vector<16x32xf32> to vector<16x4xf32>
    %160 = vector.shape_cast %159 : vector<16x4xf32> to vector<2x8x4xf32>
    %161 = vector.extract_strided_slice %9 {offsets = [0, 28], sizes = [16, 4], strides = [1, 1]} : vector<16x32xf32> to vector<16x4xf32>
    %162 = vector.shape_cast %161 : vector<16x4xf32> to vector<2x8x4xf32>
    "tpu.trace_start"() <{level = 10 : i32, message = "bqd,bkd->bqk"}> : () -> ()
    %cst_41 = arith.constant dense<0.000000e+00> : vector<2x8x8xf32>
    %163 = tpu.matmul %158, %160, %cst_41 {dimension_numbers = #tpu.dot_dimension_numbers<[2], [2], [1], [1], [0, 0, 0, 1, 1, 1], [0], [0]>} : vector<2x8x4xf32>, vector<2x8x4xf32>, vector<2x8x8xf32> -> vector<2x8x8xf32>
    "tpu.trace_stop"() : () -> ()
    %cst_42 = arith.constant 5.000000e-01 : f32
    %164 = vector.broadcast %cst_42 : f32 to vector<2x8x8xf32>
    %165 = arith.mulf %163, %164 : vector<2x8x8xf32>
    %cst_43 = arith.constant dense<0xFF800000> : vector<2x8xf32>
    %166 = vector.multi_reduction <maximumf>, %165, %cst_43 [2] : vector<2x8x8xf32> to vector<2x8xf32>
    %167 = vector.shape_cast %166 : vector<2x8xf32> to vector<2x8x1xf32>
    %168 = vector.broadcast %167 : vector<2x8x1xf32> to vector<2x8x8xf32>
    %169 = arith.subf %165, %168 : vector<2x8x8xf32>
    %170 = math.exp %169 : vector<2x8x8xf32>
    %cst_44 = arith.constant dense<0.000000e+00> : vector<2x8xf32>
    %171 = vector.multi_reduction <add>, %170, %cst_44 [2] : vector<2x8x8xf32> to vector<2x8xf32>
    %172 = vector.shape_cast %171 : vector<2x8xf32> to vector<2x8x1xf32>
    %173 = tpu.reciprocal %172 {approx = true} : vector<2x8x1xf32> -> vector<2x8x1xf32>
    %174 = vector.broadcast %173 : vector<2x8x1xf32> to vector<2x8x8xf32>
    %175 = arith.mulf %170, %174 : vector<2x8x8xf32>
    "tpu.trace_start"() <{level = 10 : i32, message = "bqk,bkd->bqd"}> : () -> ()
    %cst_45 = arith.constant dense<0.000000e+00> : vector<2x8x4xf32>
    %176 = tpu.matmul %175, %162, %cst_45 {dimension_numbers = #tpu.dot_dimension_numbers<[2], [1], [1], [2], [0, 0, 0, 1, 1, 2], [0], [0]>} : vector<2x8x8xf32>, vector<2x8x4xf32>, vector<2x8x4xf32> -> vector<2x8x4xf32>
    "tpu.trace_stop"() : () -> ()
    %177 = vector.shape_cast %176 : vector<2x8x4xf32> to vector<16x4xf32>
    %178 = tpu.concatenate %30, %51, %72, %93, %114, %135, %156, %177 in 1 : vector<16x4xf32>, vector<16x4xf32>, vector<16x4xf32>, vector<16x4xf32>, vector<16x4xf32>, vector<16x4xf32>, vector<16x4xf32>, vector<16x4xf32> -> vector<16x32xf32>
    %c0_46 = arith.constant 0 : index
    %c0_47 = arith.constant 0 : index
    %179 = vector.load %arg4[%c0_46, %c0_47] : memref<32x32xf32, #tpu.memory_space<vmem>>, vector<32x32xf32>
    %cst_48 = arith.constant dense<0.000000e+00> : vector<16x32xf32>
    %180 = tpu.matmul %178, %179, %cst_48 {dimension_numbers = #tpu.dot_dimension_numbers<[1], [0], [0], [1], [0, 0, 1, 1], [], []>} : vector<16x32xf32>, vector<32x32xf32>, vector<16x32xf32> -> vector<16x32xf32>
    %c0_49 = arith.constant 0 : index
    %c0_50 = arith.constant 0 : index
    %181 = vector.load %arg5[%c0_49, %c0_50] : memref<1x32xf32, #tpu.memory_space<vmem>>, vector<1x32xf32>
    %182 = vector.broadcast %181 : vector<1x32xf32> to vector<16x32xf32>
    %183 = arith.addf %180, %182 : vector<16x32xf32>
    %184 = arith.addf %1, %183 : vector<16x32xf32>
    %cst_51 = arith.constant dense<0.000000e+00> : vector<16xf32>
    %185 = vector.multi_reduction <add>, %184, %cst_51 [1] : vector<16x32xf32> to vector<16xf32>
    %186 = vector.shape_cast %185 : vector<16xf32> to vector<16x1xf32>
    %cst_52 = arith.constant 3.200000e+01 : f32
    %187 = vector.broadcast %cst_52 : f32 to vector<16x1xf32>
    %188 = arith.divf %186, %187 : vector<16x1xf32>
    %189 = vector.broadcast %188 : vector<16x1xf32> to vector<16x32xf32>
    %190 = arith.subf %184, %189 : vector<16x32xf32>
    %191 = arith.mulf %190, %190 : vector<16x32xf32>
    %cst_53 = arith.constant dense<0.000000e+00> : vector<16xf32>
    %192 = vector.multi_reduction <add>, %191, %cst_53 [1] : vector<16x32xf32> to vector<16xf32>
    %193 = vector.shape_cast %192 : vector<16xf32> to vector<16x1xf32>
    %cst_54 = arith.constant 3.200000e+01 : f32
    %194 = vector.broadcast %cst_54 : f32 to vector<16x1xf32>
    %195 = arith.divf %193, %194 : vector<16x1xf32>
    %196 = vector.broadcast %188 : vector<16x1xf32> to vector<16x32xf32>
    %197 = arith.subf %184, %196 : vector<16x32xf32>
    %cst_55 = arith.constant 9.99999974E-6 : f32
    %198 = vector.broadcast %cst_55 : f32 to vector<16x1xf32>
    %199 = arith.addf %195, %198 : vector<16x1xf32>
    %200 = math.rsqrt %199 : vector<16x1xf32>
    %201 = vector.broadcast %200 : vector<16x1xf32> to vector<16x32xf32>
    %202 = arith.mulf %197, %201 : vector<16x32xf32>
    %c0_56 = arith.constant 0 : index
    %c0_57 = arith.constant 0 : index
    %203 = vector.load %arg6[%c0_56, %c0_57] : memref<1x32xf32, #tpu.memory_space<vmem>>, vector<1x32xf32>
    %204 = vector.broadcast %203 : vector<1x32xf32> to vector<16x32xf32>
    %205 = arith.mulf %202, %204 : vector<16x32xf32>
    %c0_58 = arith.constant 0 : index
    %c0_59 = arith.constant 0 : index
    %206 = vector.load %arg7[%c0_58, %c0_59] : memref<1x32xf32, #tpu.memory_space<vmem>>, vector<1x32xf32>
    %207 = vector.broadcast %206 : vector<1x32xf32> to vector<16x32xf32>
    %208 = arith.addf %205, %207 : vector<16x32xf32>
    %c0_60 = arith.constant 0 : index
    %c0_61 = arith.constant 0 : index
    %209 = vector.load %arg8[%c0_60, %c0_61] : memref<32x80xf32, #tpu.memory_space<vmem>>, vector<32x80xf32>
    %cst_62 = arith.constant dense<0.000000e+00> : vector<16x80xf32>
    %210 = tpu.matmul %208, %209, %cst_62 {dimension_numbers = #tpu.dot_dimension_numbers<[1], [0], [0], [1], [0, 0, 1, 1], [], []>} : vector<16x32xf32>, vector<32x80xf32>, vector<16x80xf32> -> vector<16x80xf32>
    %c0_63 = arith.constant 0 : index
    %c0_64 = arith.constant 0 : index
    %211 = vector.load %arg9[%c0_63, %c0_64] : memref<1x80xf32, #tpu.memory_space<vmem>>, vector<1x80xf32>
    %212 = vector.broadcast %211 : vector<1x80xf32> to vector<16x80xf32>
    %213 = arith.addf %210, %212 : vector<16x80xf32>
    %cst_65 = arith.constant 0.000000e+00 : f32
    %214 = vector.broadcast %cst_65 : f32 to vector<16x80xf32>
    %215 = arith.maximumf %213, %214 : vector<16x80xf32>
    %216 = vector.extract_strided_slice %215 {offsets = [0, 0], sizes = [16, 32], strides = [1, 1]} : vector<16x80xf32> to vector<16x32xf32>
    %217 = vector.extract_strided_slice %215 {offsets = [0, 32], sizes = [16, 16], strides = [1, 1]} : vector<16x80xf32> to vector<16x16xf32>
    %218 = vector.extract_strided_slice %215 {offsets = [0, 48], sizes = [16, 32], strides = [1, 1]} : vector<16x80xf32> to vector<16x32xf32>
    %c0_66 = arith.constant 0 : index
    %c0_67 = arith.constant 0 : index
    %219 = vector.load %arg10[%c0_66, %c0_67] : memref<32x16xf32, #tpu.memory_space<vmem>>, vector<32x16xf32>
    %cst_68 = arith.constant dense<0.000000e+00> : vector<16x16xf32>
    %220 = tpu.matmul %216, %219, %cst_68 {dimension_numbers = #tpu.dot_dimension_numbers<[1], [0], [0], [1], [0, 0, 1, 1], [], []>} : vector<16x32xf32>, vector<32x16xf32>, vector<16x16xf32> -> vector<16x16xf32>
    %c0_69 = arith.constant 0 : index
    %c0_70 = arith.constant 0 : index
    %221 = vector.load %arg11[%c0_69, %c0_70] : memref<1x16xf32, #tpu.memory_space<vmem>>, vector<1x16xf32>
    %222 = vector.broadcast %221 : vector<1x16xf32> to vector<16x16xf32>
    %223 = arith.addf %220, %222 : vector<16x16xf32>
    %cst_71 = arith.constant 0.000000e+00 : f32
    %224 = vector.broadcast %cst_71 : f32 to vector<16x16xf32>
    %225 = arith.maximumf %223, %224 : vector<16x16xf32>
    %c0_72 = arith.constant 0 : index
    %c0_73 = arith.constant 0 : index
    %226 = vector.load %arg12[%c0_72, %c0_73] : memref<16x200xf32, #tpu.memory_space<vmem>>, vector<16x200xf32>
    %cst_74 = arith.constant dense<0.000000e+00> : vector<16x200xf32>
    %227 = tpu.matmul %225, %226, %cst_74 {dimension_numbers = #tpu.dot_dimension_numbers<[1], [0], [0], [1], [0, 0, 1, 1], [], []>} : vector<16x16xf32>, vector<16x200xf32>, vector<16x200xf32> -> vector<16x200xf32>
    %c0_75 = arith.constant 0 : index
    %c0_76 = arith.constant 0 : index
    %228 = vector.load %arg13[%c0_75, %c0_76] : memref<1x200xf32, #tpu.memory_space<vmem>>, vector<1x200xf32>
    %229 = vector.broadcast %228 : vector<1x200xf32> to vector<16x200xf32>
    %230 = arith.addf %227, %229 : vector<16x200xf32>
    %231 = vector.shape_cast %230 : vector<16x200xf32> to vector<16x4x50xf32>
    %cst_77 = arith.constant dense<0xFF800000> : vector<16x4xf32>
    %232 = vector.multi_reduction <maximumf>, %231, %cst_77 [2] : vector<16x4x50xf32> to vector<16x4xf32>
    %233 = vector.shape_cast %232 : vector<16x4xf32> to vector<16x4x1xf32>
    %234 = vector.broadcast %233 : vector<16x4x1xf32> to vector<16x4x50xf32>
    %235 = arith.subf %231, %234 : vector<16x4x50xf32>
    %236 = math.exp %235 : vector<16x4x50xf32>
    %c0_78 = arith.constant 0 : index
    %c0_79 = arith.constant 0 : index
    %237 = vector.load %arg18[%c0_78, %c0_79] : memref<1x50xf32, #tpu.memory_space<vmem>>, vector<1x50xf32>
    %238 = vector.shape_cast %237 : vector<1x50xf32> to vector<1x1x50xf32>
    %239 = vector.broadcast %238 : vector<1x1x50xf32> to vector<16x4x50xf32>
    %240 = arith.mulf %236, %239 : vector<16x4x50xf32>
    %cst_80 = arith.constant dense<0.000000e+00> : vector<16x4xf32>
    %241 = vector.multi_reduction <add>, %240, %cst_80 [2] : vector<16x4x50xf32> to vector<16x4xf32>
    %cst_81 = arith.constant dense<0.000000e+00> : vector<16x4xf32>
    %242 = vector.multi_reduction <add>, %236, %cst_81 [2] : vector<16x4x50xf32> to vector<16x4xf32>
    %243 = tpu.reciprocal %242 {approx = true} : vector<16x4xf32> -> vector<16x4xf32>
    %244 = arith.mulf %241, %243 : vector<16x4xf32>
    %c0_82 = arith.constant 0 : index
    %c0_83 = arith.constant 0 : index
    %245 = vector.load %arg14[%c0_82, %c0_83] : memref<16x4xf32, #tpu.memory_space<vmem>>, vector<16x4xf32>
    %cst_84 = arith.constant dense<0.000000e+00> : vector<16x4xf32>
    %246 = tpu.matmul %217, %245, %cst_84 {dimension_numbers = #tpu.dot_dimension_numbers<[1], [0], [0], [1], [0, 0, 1, 1], [], []>} : vector<16x16xf32>, vector<16x4xf32>, vector<16x4xf32> -> vector<16x4xf32>
    %c0_85 = arith.constant 0 : index
    %c0_86 = arith.constant 0 : index
    %247 = vector.load %arg15[%c0_85, %c0_86] : memref<1x4xf32, #tpu.memory_space<vmem>>, vector<1x4xf32>
    %248 = vector.broadcast %247 : vector<1x4xf32> to vector<16x4xf32>
    %249 = arith.addf %246, %248 : vector<16x4xf32>
    %cst_87 = arith.constant 0.000000e+00 : f32
    %250 = vector.broadcast %cst_87 : f32 to vector<16x4xf32>
    %251 = arith.subf %250, %249 : vector<16x4xf32>
    %252 = math.exp %251 : vector<16x4xf32>
    %cst_88 = arith.constant 1.000000e+00 : f32
    %253 = vector.broadcast %cst_88 : f32 to vector<16x4xf32>
    %254 = arith.addf %253, %252 : vector<16x4xf32>
    %255 = tpu.reciprocal %254 {approx = true} : vector<16x4xf32> -> vector<16x4xf32>
    %c0_89 = arith.constant 0 : index
    %c0_90 = arith.constant 0 : index
    %256 = vector.load %arg16[%c0_89, %c0_90] : memref<32x50xf32, #tpu.memory_space<vmem>>, vector<32x50xf32>
    %cst_91 = arith.constant dense<0.000000e+00> : vector<16x50xf32>
    %257 = tpu.matmul %218, %256, %cst_91 {dimension_numbers = #tpu.dot_dimension_numbers<[1], [0], [0], [1], [0, 0, 1, 1], [], []>} : vector<16x32xf32>, vector<32x50xf32>, vector<16x50xf32> -> vector<16x50xf32>
    %c0_92 = arith.constant 0 : index
    %c0_93 = arith.constant 0 : index
    %258 = vector.load %arg17[%c0_92, %c0_93] : memref<1x50xf32, #tpu.memory_space<vmem>>, vector<1x50xf32>
    %259 = vector.broadcast %258 : vector<1x50xf32> to vector<16x50xf32>
    %260 = arith.addf %257, %259 : vector<16x50xf32>
    %cst_94 = arith.constant 0.000000e+00 : f32
    %261 = vector.broadcast %cst_94 : f32 to vector<16x70xf32>
    %262 = tpu.concatenate %244, %255, %260, %261 in 1 : vector<16x4xf32>, vector<16x4xf32>, vector<16x50xf32>, vector<16x70xf32> -> vector<16x128xf32>
    %263 = vector.shape_cast %262 : vector<16x128xf32> to vector<2x8x128xf32>
    %c0_95 = arith.constant 0 : index
    %c0_96 = arith.constant 0 : index
    %c0_97 = arith.constant 0 : index
    %264 = vector.load %arg19[%c0_95, %c0_96, %c0_97] : memref<2x8x128xf32, #tpu.memory_space<vmem>>, vector<2x8x128xf32>
    tpu.vector_store %arg19[%c0_95, %c0_96, %c0_97], %263 {strides = array<i32>} : memref<2x8x128xf32, #tpu.memory_space<vmem>>, vector<2x8x128xf32>,
    return
  }
  func.func @transform_0(%arg0: i32) -> (i32, i32, i32) {
    %c0_i32 = arith.constant 0 : i32
    %c0_i32_0 = arith.constant 0 : i32
    %c0_i32_1 = arith.constant 0 : i32
    return %arg0, %c0_i32, %c0_i32_0 : i32, i32, i32
  }
  func.func @transform_1(%arg0: i32) -> (i32, i32) {
    %c0_i32 = arith.constant 0 : i32
    %c0_i32_0 = arith.constant 0 : i32
    %c0_i32_1 = arith.constant 0 : i32
    return %c0_i32, %c0_i32_0 : i32, i32
  }
  func.func @transform_2(%arg0: i32) -> (i32, i32) {
    %c0_i32 = arith.constant 0 : i32
    %c0_i32_0 = arith.constant 0 : i32
    %c0_i32_1 = arith.constant 0 : i32
    return %c0_i32, %c0_i32_0 : i32, i32
  }
  func.func @transform_3(%arg0: i32) -> (i32, i32) {
    %c0_i32 = arith.constant 0 : i32
    %c0_i32_0 = arith.constant 0 : i32
    %c0_i32_1 = arith.constant 0 : i32
    return %c0_i32, %c0_i32_0 : i32, i32
  }
  func.func @transform_4(%arg0: i32) -> (i32, i32) {
    %c0_i32 = arith.constant 0 : i32
    %c0_i32_0 = arith.constant 0 : i32
    %c0_i32_1 = arith.constant 0 : i32
    return %c0_i32, %c0_i32_0 : i32, i32
  }
  func.func @transform_5(%arg0: i32) -> (i32, i32) {
    %c0_i32 = arith.constant 0 : i32
    %c0_i32_0 = arith.constant 0 : i32
    %c0_i32_1 = arith.constant 0 : i32
    return %c0_i32, %c0_i32_0 : i32, i32
  }
  func.func @transform_6(%arg0: i32) -> (i32, i32) {
    %c0_i32 = arith.constant 0 : i32
    %c0_i32_0 = arith.constant 0 : i32
    %c0_i32_1 = arith.constant 0 : i32
    return %c0_i32, %c0_i32_0 : i32, i32
  }
  func.func @transform_7(%arg0: i32) -> (i32, i32) {
    %c0_i32 = arith.constant 0 : i32
    %c0_i32_0 = arith.constant 0 : i32
    %c0_i32_1 = arith.constant 0 : i32
    return %c0_i32, %c0_i32_0 : i32, i32
  }
  func.func @transform_8(%arg0: i32) -> (i32, i32) {
    %c0_i32 = arith.constant 0 : i32
    %c0_i32_0 = arith.constant 0 : i32
    %c0_i32_1 = arith.constant 0 : i32
    return %c0_i32, %c0_i32_0 : i32, i32
  }
  func.func @transform_9(%arg0: i32) -> (i32, i32) {
    %c0_i32 = arith.constant 0 : i32
    %c0_i32_0 = arith.constant 0 : i32
    %c0_i32_1 = arith.constant 0 : i32
    return %c0_i32, %c0_i32_0 : i32, i32
  }
  func.func @transform_10(%arg0: i32) -> (i32, i32) {
    %c0_i32 = arith.constant 0 : i32
    %c0_i32_0 = arith.constant 0 : i32
    %c0_i32_1 = arith.constant 0 : i32
    return %c0_i32, %c0_i32_0 : i32, i32
  }
  func.func @transform_11(%arg0: i32) -> (i32, i32) {
    %c0_i32 = arith.constant 0 : i32
    %c0_i32_0 = arith.constant 0 : i32
    %c0_i32_1 = arith.constant 0 : i32
    return %c0_i32, %c0_i32_0 : i32, i32
  }
  func.func @transform_12(%arg0: i32) -> (i32, i32) {
    %c0_i32 = arith.constant 0 : i32
    %c0_i32_0 = arith.constant 0 : i32
    %c0_i32_1 = arith.constant 0 : i32
    return %c0_i32, %c0_i32_0 : i32, i32
  }
  func.func @transform_13(%arg0: i32) -> (i32, i32) {
    %c0_i32 = arith.constant 0 : i32
    %c0_i32_0 = arith.constant 0 : i32
    %c0_i32_1 = arith.constant 0 : i32
    return %c0_i32, %c0_i32_0 : i32, i32
  }
  func.func @transform_14(%arg0: i32) -> (i32, i32) {
    %c0_i32 = arith.constant 0 : i32
    %c0_i32_0 = arith.constant 0 : i32
    %c0_i32_1 = arith.constant 0 : i32
    return %c0_i32, %c0_i32_0 : i32, i32
  }
  func.func @transform_15(%arg0: i32) -> (i32, i32) {
    %c0_i32 = arith.constant 0 : i32
    %c0_i32_0 = arith.constant 0 : i32
    %c0_i32_1 = arith.constant 0 : i32
    return %c0_i32, %c0_i32_0 : i32, i32
  }
  func.func @transform_16(%arg0: i32) -> (i32, i32) {
    %c0_i32 = arith.constant 0 : i32
    %c0_i32_0 = arith.constant 0 : i32
    %c0_i32_1 = arith.constant 0 : i32
    return %c0_i32, %c0_i32_0 : i32, i32
  }
  func.func @transform_17(%arg0: i32) -> (i32, i32) {
    %c0_i32 = arith.constant 0 : i32
    %c0_i32_0 = arith.constant 0 : i32
    %c0_i32_1 = arith.constant 0 : i32
    return %c0_i32, %c0_i32_0 : i32, i32
  }
  func.func @transform_18(%arg0: i32) -> (i32, i32, i32) {
    %c0_i32 = arith.constant 0 : i32
    %c0_i32_0 = arith.constant 0 : i32
    %c0_i32_1 = arith.constant 0 : i32
    return %arg0, %c0_i32, %c0_i32_0 : i32, i32, i32
  }
}

</mosaic_0001>

<bundles_post_ra>
// kernel: tpu_custom_call.1
= control target key start
LH: loop header
LB: loop body
LE: loop exit
PB: predicated region body
PF: predicated region fallthrough
CT: control target
= control target key end

     0   :  { %s5773_s0 = inlined_call_operand.hbm [shape: f32[2,8,32], index: 0, kind: input, shape index: {}]   ;;  %s5774_s1 = inlined_call_operand.vmem [shape: f32[32,96], index: 1, kind: input, shape index: {}]   ;;  %s5775_s2 = inlined_call_operand.hbm [shape: f32[1,96], index: 2, kind: input, shape index: {}]   ;;  %s5776_s3 = inlined_call_operand.vmem [shape: f32[32,32], index: 3, kind: input, shape index: {}]   ;;  %s5777_s4 = inlined_call_operand.hbm [shape: f32[1,32], index: 4, kind: input, shape index: {}]   ;;  %s5778_s5 = inlined_call_operand.hbm [shape: f32[1,32], index: 5, kind: input, shape index: {}]   ;;  %s5779_s6 = inlined_call_operand.hbm [shape: f32[1,32], index: 6, kind: input, shape index: {}]   ;;  %s5780_s7 = inlined_call_operand.hbm [shape: f32[32,80], index: 7, kind: input, shape index: {}]   ;;  %s5781_s8 = inlined_call_operand.hbm [shape: f32[1,80], index: 8, kind: input, shape index: {}]   ;;  %s5782_s9 = inlined_call_operand.vmem [shape: f32[32,16], index: 9, kind: input, shape index: {}]   ;;  %s5783_s10 = inlined_call_operand.hbm [shape: f32[1,16], index: 10, kind: input, shape index: {}]   ;;  %s5784_s11 = inlined_call_operand.hbm [shape: f32[16,200], index: 11, kind: input, shape index: {}]   ;;  %s5785_s12 = inlined_call_operand.vmem [shape: f32[1,200], index: 12, kind: input, shape index: {}]   ;;  %s5786_s13 = inlined_call_operand.vmem [shape: f32[16,4], index: 13, kind: input, shape index: {}]   ;;  %s5787_s14 = inlined_call_operand.vmem [shape: f32[1,4], index: 14, kind: input, shape index: {}]   ;;  %s5788_s15 = inlined_call_operand.hbm [shape: f32[32,50], index: 15, kind: input, shape index: {}]   ;;  %s5789_s16 = inlined_call_operand.vmem [shape: f32[1,50], index: 16, kind: input, shape index: {}]   ;;  %s5790_s17 = inlined_call_operand.vmem [shape: f32[1,50], index: 17, kind: input, shape index: {}]   ;;  %s5791_s18 = inlined_call_operand.hbm [shape: f32[2,8,128], index: 18, kind: output, shape index: {}]  }
   0x1   :  { %5793 = sst [smem:[#allocation27_spill]] %s5773_s0 }
   0x2   :  { %5794 = sst [smem:[#allocation28_spill]] %s5774_s1 }
   0x3   :  { %5795 = sst [smem:[#allocation29_spill]] %s5775_s2 }
   0x4   :  { %23 = vsyncpa [#allocation3], 0 }
   0x5   :  { %24 = vsyncpa [#allocation6], 0 }
   0x6   :  { %25 = vsyncpa [#allocation9], 0 }
   0x7   :  { %26 = vsyncpa [#allocation12], 0 }
   0x8   :  { %27 = vsyncpa [#allocation15], 0 }
   0x9   :  { %28 = vsyncpa [#allocation18], 0 }
   0xa   :  { %29 = vsyncpa [#allocation4], 0  ;;  %s5012_s27 = smov [#allocation5]   ;;  %s5013_s29 = smov [#allocation8]  }
   0xb   :  { %s50_s28 = sshll.u32 %s5012_s27, 4  ;;  %s72_s30 = sshll.u32 %s5013_s29, 4  ;;  %s51_s28 = int_to_ptr.vmem [resolvable:$true] %s50_s28  ;;  %s73_s30 = int_to_ptr.vmem [resolvable:$true] %s72_s30 }
   0xc   :  { %s4786_s0 = scalar_lea.vmem %s51_s28, 16  ;;  %s4790_s19 = scalar_lea.vmem %s51_s28, 32 }
   0xd   :  { %p4787_p0 = scmp.ne.s32.totalorder %s51_s28, %s4786_s0  ;;  %p4791_p1 = scmp.lt.s32.totalorder %s51_s28, %s51_s28 }
   0xe   :  { %p4792_p2 = scmp.lt.s32.totalorder %s4790_s19, %s4786_s0 }
  0x10   :  { %p4793_p3 = por %p4792_p2, %p4791_p1 }
  0x12   :  { %p4794_p4 = pnand %p4793_p3, %p4787_p0 }
  0x14   :  { %4797 = shalt.err (!%p4794_p4)
}
  0x15   :  { %s5796_s21 = sld [smem:[#allocation29_spill]]  ;;  %s4806_s22 = scalar_lea.vmem %s73_s30, 16 }
  0x16   :  { %p4807_p5 = scmp.ne.s32.totalorder %s73_s30, %s4806_s22  ;;  %s4810_s2 = scalar_lea.vmem %s73_s30, 32 }
  0x17   :  { %p4811_p6 = scmp.lt.s32.totalorder %s73_s30, %s73_s30  ;;  %p4812_p7 = scmp.lt.s32.totalorder %s4810_s2, %s4806_s22 }
  0x19   :  { %p4813_p8 = por %p4812_p7, %p4811_p6 }
  0x1b   :  { %53 = dma.hbm_to_vmem [thread:$0]  %s5796_s21, 16, %s51_s28, [#allocation6]  }
  0x1c   :  { %p4814_p9 = pnand %p4813_p8, %p4807_p5 }
  0x1e   :  { %4817 = shalt.err (!%p4814_p9)
}
  0x1f   :  { %75 = dma.hbm_to_vmem [thread:$0]  %s5778_s5, 16, %s73_s30, [#allocation9]  }
  0x20   :  { %s5014_s25 = smov [#allocation11]   ;;  %s5015_s27 = smov [#allocation14]  }
  0x21   :  { %s91_s26 = sshll.u32 %s5014_s25, 4  ;;  %s116_s29 = sshll.u32 %s5015_s27, 4  ;;  %s92_s26 = int_to_ptr.vmem [resolvable:$true] %s91_s26  ;;  %s117_s29 = int_to_ptr.vmem [resolvable:$true] %s116_s29 }
  0x22   :  { %s4826_s0 = scalar_lea.vmem %s92_s26, 512  ;;  %p4831_p11 = scmp.lt.s32.totalorder %s92_s26, %s92_s26 }
  0x23   :  { %p4827_p10 = scmp.ne.s32.totalorder %s92_s26, %s4826_s0  ;;  %p4832_p12 = scmp.lt.s32.totalorder %s4826_s0, %s4826_s0 }
  0x25   :  { %p4833_p13 = por %p4832_p12, %p4831_p11 }
  0x27   :  { %p4834_p0 = pnand %p4833_p13, %p4827_p10 }
  0x29   :  { %4837 = shalt.err (!%p4834_p0)
}
  0x2a   :  { %s5016_s28 = smov 128   ;;  %s5017_s19 = smov 8  }
  0x2b   :  { %97 = dma.hbm_to_vmem [thread:$0]  %s5780_s7, 512, %s92_s26, [#allocation12], %s5016_s28, %s5016_s28, %s5017_s19  }
  0x2c   :  { %s4846_s30 = scalar_lea.vmem %s117_s29, 16  ;;  %s4850_s20 = scalar_lea.vmem %s117_s29, 32 }
  0x2d   :  { %p4847_p1 = scmp.ne.s32.totalorder %s117_s29, %s4846_s30  ;;  %p4851_p2 = scmp.lt.s32.totalorder %s117_s29, %s117_s29 }
  0x2e   :  { %p4852_p3 = scmp.lt.s32.totalorder %s4850_s20, %s4846_s30 }
  0x30   :  { %p4853_p4 = por %p4852_p3, %p4851_p2 }
  0x32   :  { %p4854_p5 = pnand %p4853_p4, %p4847_p1 }
  0x34   :  { %4857 = shalt.err (!%p4854_p5)
}
  0x35   :  { %119 = dma.hbm_to_vmem [thread:$0]  %s5783_s10, 16, %s117_s29, [#allocation15]  }
  0x36   :  { %s5018_s2 = smov [#allocation2]   ;;  %s5019_s24 = smov [#allocation7]  }
  0x37   :  { %s35_s23 = sshll.u32 %s5018_s2, 4  ;;  %s62_s25 = sshll.u32 %s5019_s24, 4  ;;  %s36_s23 = int_to_ptr.vmem [resolvable:$true] %s35_s23  ;;  %s63_s25 = int_to_ptr.vmem [resolvable:$true] %s62_s25 }
  0x38   :  { %s4866_s27 = scalar_lea.vmem %s36_s23, 256  ;;  %p4871_p7 = scmp.lt.s32.totalorder %s36_s23, %s36_s23 }
  0x39   :  { %p4867_p6 = scmp.ne.s32.totalorder %s36_s23, %s4866_s27  ;;  %p4872_p8 = scmp.lt.s32.totalorder %s4866_s27, %s4866_s27 }
  0x3b   :  { %p4873_p9 = por %p4872_p8, %p4871_p7 }
  0x3d   :  { %p4874_p10 = pnand %p4873_p9, %p4867_p6 }
  0x3f   :  { %4877 = shalt.err (!%p4874_p10)
}
  0x40   :  { %s5797_s0 = sld [smem:[#allocation27_spill]]  ;;  %s4886_s10 = scalar_lea.vmem %s63_s25, 16 }
  0x41   :  { %p4887_p11 = scmp.ne.s32.totalorder %s63_s25, %s4886_s10  ;;  %s4890_s29 = scalar_lea.vmem %s63_s25, 32 }
  0x42   :  { %p4891_p12 = scmp.lt.s32.totalorder %s63_s25, %s63_s25  ;;  %p4892_p13 = scmp.lt.s32.totalorder %s4890_s29, %s4886_s10 }
  0x44   :  { %p4893_p0 = por %p4892_p13, %p4891_p12 }
  0x46   :  { %41 = dma.hbm_to_vmem [thread:$0]  %s5797_s0, 256, %s36_s23, [#allocation3], %s5016_s28, %s5016_s28, %s5017_s19  }
  0x47   :  { %p4894_p1 = pnand %p4893_p0, %p4887_p11 }
  0x49   :  { %4897 = shalt.err (!%p4894_p1)
}
  0x4a   :  { %65 = dma.hbm_to_vmem [thread:$0]  %s5777_s4, 16, %s63_s25, [#allocation6]  }
  0x4b   :  { %s5020_s30 = smov [#allocation10]   ;;  %s5021_s21 = smov [#allocation13]  }
  0x4c   :  { %s82_s20 = sshll.u32 %s5020_s30, 4  ;;  %s104_s22 = sshll.u32 %s5021_s21, 4  ;;  %s83_s20 = int_to_ptr.vmem [resolvable:$true] %s82_s20  ;;  %s105_s22 = int_to_ptr.vmem [resolvable:$true] %s104_s22 }
  0x4d   :  { %s4906_s2 = scalar_lea.vmem %s83_s20, 16  ;;  %s4910_s23 = scalar_lea.vmem %s83_s20, 32 }
  0x4e   :  { %p4907_p2 = scmp.ne.s32.totalorder %s83_s20, %s4906_s2  ;;  %p4911_p3 = scmp.lt.s32.totalorder %s83_s20, %s83_s20 }
  0x4f   :  { %p4912_p4 = scmp.lt.s32.totalorder %s4910_s23, %s4906_s2 }
  0x51   :  { %p4913_p5 = por %p4912_p4, %p4911_p3 }
  0x53   :  { %p4914_p6 = pnand %p4913_p5, %p4907_p2 }
  0x55   :  { %4917 = shalt.err (!%p4914_p6)
}
  0x56   :  { %85 = dma.hbm_to_vmem [thread:$0]  %s5779_s6, 16, %s83_s20, [#allocation9]  }
  0x57   :  { %s4926_s7 = scalar_lea.vmem %s105_s22, 16  ;;  %s4930_s4 = scalar_lea.vmem %s105_s22, 32 }
  0x58   :  { %p4927_p7 = scmp.ne.s32.totalorder %s105_s22, %s4926_s7  ;;  %p4931_p8 = scmp.lt.s32.totalorder %s105_s22, %s105_s22 }
  0x59   :  { %p4932_p9 = scmp.lt.s32.totalorder %s4930_s4, %s4926_s7 }
  0x5b   :  { %p4933_p10 = por %p4932_p9, %p4931_p8 }
  0x5d   :  { %p4934_p11 = pnand %p4933_p10, %p4927_p7 }
  0x5f   :  { %4937 = shalt.err (!%p4934_p11)
}
  0x60   :  { %107 = dma.hbm_to_vmem [thread:$0]  %s5781_s8, 16, %s105_s22, [#allocation12]  }
  0x61   :  { %s5022_s0 = smov [#allocation16]  }
  0x62   :  { %s125_s10 = sshll.u32 %s5022_s0, 4  ;;  %s126_s10 = int_to_ptr.vmem [resolvable:$true] %s125_s10 }
  0x63   :  { %s4946_s29 = scalar_lea.vmem %s126_s10, 512  ;;  %p4951_p13 = scmp.lt.s32.totalorder %s126_s10, %s126_s10 }
  0x64   :  { %p4947_p12 = scmp.ne.s32.totalorder %s126_s10, %s4946_s29  ;;  %p4952_p0 = scmp.lt.s32.totalorder %s4946_s29, %s4946_s29 }
  0x66   :  { %p4953_p1 = por %p4952_p0, %p4951_p13 }
  0x68   :  { %p4954_p2 = pnand %p4953_p1, %p4947_p12 }
  0x6a   :  { %4957 = shalt.err (!%p4954_p2)
}
  0x6b   :  { %s5023_s6 = smov 256   ;;  %s5024_s1 = smov 16  }
  0x6c   :  { %131 = dma.hbm_to_vmem [thread:$0]  %s5784_s11, 512, %s126_s10, [#allocation15], %s5023_s6, %s5023_s6, %s5024_s1  }
  0x6d   :  { %s5025_s20 = smov [#allocation17]  }
  0x6e   :  { %s143_s21 = sshll.u32 %s5025_s20, 4  ;;  %s144_s21 = int_to_ptr.vmem [resolvable:$true] %s143_s21 }
  0x6f   :  { %s4966_s8 = scalar_lea.vmem %s144_s21, 512  ;;  %p4971_p4 = scmp.lt.s32.totalorder %s144_s21, %s144_s21 }
  0x70   :  { %p4967_p3 = scmp.ne.s32.totalorder %s144_s21, %s4966_s8  ;;  %p4972_p5 = scmp.lt.s32.totalorder %s4966_s8, %s4966_s8 }
  0x72   :  { %p4973_p6 = por %p4972_p5, %p4971_p4 }
  0x74   :  { %p4974_p7 = pnand %p4973_p6, %p4967_p3 }
  0x76   :  { %4977 = shalt.err (!%p4974_p7)
}
  0x77   :  { %149 = dma.hbm_to_vmem [thread:$0]  %s5788_s15, 512, %s144_s21, [#allocation18], %s5016_s28, %s5016_s28, %s5017_s19  }
  0x78   :  { %4998 = dma.done.wait [#allocation3], 256  }
  0x79   :  { %4999 = vsyncadd [#allocation3], 4294967040 }
  0x7a   :  { %5000 = dma.done.wait [#allocation6], 32  }
  0x7b   :  { %5001 = vsyncadd [#allocation6], 4294967264 }
  0x7c   :  { %5002 = dma.done.wait [#allocation9], 32  }
  0x7d   :  { %5003 = vsyncadd [#allocation9], 4294967264 }
  0x7e   :  { %5004 = dma.done.wait [#allocation12], 528  }
  0x7f   :  { %5005 = vsyncadd [#allocation12], 4294966768 }
  0x80   :  { %5006 = dma.done.wait [#allocation15], 528  }
  0x81   :  { %5007 = vsyncadd [#allocation15], 4294966768 }
  0x82   :  { %5008 = dma.done.wait [#allocation18], 512  }
  0x83   :  { %5009 = vsyncadd [#allocation18], 4294966784  ;;  %vm197_vm0 = vcmask 261120   ;;  %s5798_s24 = sld [smem:[#allocation28_spill]]  ;;  %v184_v2 = vld [vmem:[#allocation2] sm:$0xff]  ;;  %v185_v5 = vld [vmem:[#allocation2 + $0x8] sm:$0xff] }
  0x84   :  { %4373 = vmatprep.mubr.msk.f32.mxu0 %vm197_vm0, %v184_v2  ;;  %v5026_v6 = vmov 0.0   ;;  %vm5027_vm1 = vmmov 0   ;;  %v4196_v8 = vld [vmem:[#allocation5] ss:$0 sm:$0xff]  ;;  %s5028_s0 = smov 96   ;;  %vm282_vm2 = vcmask 31744  }
  0x85   :  { %4376 = vmatprep.subr.mxu1 %v5026_v6  ;;  %4378 = vmatprep.mubr.msk.f32.mxu1 %vm5027_vm1, %v5026_v6  ;;  %vm436_vm3 = vcmask 64512   ;;  %s5029_s10 = smov 64   ;;  %s5030_s29 = smov 92   ;;  %vm2995_vm4 = vcmask 97280   ;;  %vm2998_vm5 = vcmask 130048   ;;  %vm3001_vm6 = vcmask 162816  }
  0x86   :  { %s5031_s6 = smov 124   ;;  %s5032_s5 = smov 60   ;;  %vm3007_vm7 = vcmask 228352   ;;  %vm3004_vm8 = vcmask 195584   ;;  %vm3600_vm9 = vcmask 404480   ;;  %vm4126_vm10 = vcmask 1041409  }
  0x87   :  { %s5033_s30 = smov 88   ;;  %s5034_s20 = smov 120   ;;  %vm4128_vm11 = vcmask 1042434   ;;  %vm4130_vm12 = vcmask 1043459   ;;  %vm4132_vm13 = vcmask 1044484   ;;  %vm4134_vm14 = vcmask 1045509  }
  0x88   :  { %s5035_s21 = smov 56   ;;  %s5036_s8 = smov 84   ;;  %vm4136_vm15 = vcmask 1046534  }
  0x89   :  { %v189_v0 = vld [vmem:[%s5798_s24 + $0x18] sm:$0xff]  ;;  %v188_v1 = vld [vmem:[%s5798_s24 + $0x10] sm:$0xff]  ;;  %v187_v3 = vld [vmem:[%s5798_s24 + $0x8] sm:$0xff]  ;;  %s5037_s22 = smov 116   ;;  %s5038_s2 = smov 52  }
  0x8a   :  { %4365 = vmatprep.subr.mxu0 %v189_v0  ;;  %v186_v4 = vld [vmem:[%s5798_s24] sm:$0xff]  ;;  %s5039_s11 = smov 80   ;;  %s5040_s23 = smov 112  }
  0x8b   :  { %4366 = vmatpush3.msra.mxu0 %v189_v0  ;;  %s5041_s24 = smov 48   ;;  %s5042_s27 = smov 76  }
  0x8c   :  { %4367 = vmatprep.subr.mxu0 %v188_v1  ;;  %s5043_s7 = smov 108   ;;  %s5044_s15 = smov 44  }
  0x8d   :  { %4368 = vmatpush3.msra.mxu0 %v188_v1  ;;  %s5045_s4 = smov 72   ;;  %s5046_s25 = smov 104  }
  0x8e   :  { %4369 = vmatprep.subr.mxu0 %v187_v3  ;;  %s5047_s26 = smov 40  }
  0x8f   :  { %4370 = vmatpush3.msra.mxu0 %v187_v3 }
  0x90   :  { %4371 = vmatprep.subr.mxu0 %v186_v4 }
  0x91   :  { %4372 = vmatpush3.msra.mxu0 %v186_v4 }
  0x92   :  { %4374 = vmatmul.mubr.msk.f32.vlgmr.msra.gmra.mxu0 %vm197_vm0, %v185_v5  ;;  %4386 = vmatprep.subr.mxu0 %v5026_v6 }
  0x93   :  { %4388 = vmatprep.mubr.msk.f32.mxu0 %vm5027_vm1, %v5026_v6 }
 0x152   :  { %v4375_v7 = vpop.f32.mrf.mxu0 }
 0x153   :  { %v5220_v11 = vadd.f32 %v4375_v7, %v4196_v8 }
 0x154   :  { %v270_v9 = vpop.f32.mrf.mxu0 }
 0x155   :  { %v5216_v10 = vadd.f32 %v4196_v8, %v270_v9 }
 0x157   :  { %280 = vrot.lane.b32.xlu0 %v5216_v10, %s5028_s0 }
 0x15b   :  { %358 = vrot.lane.b32.xlu0 %v5220_v11, %s5028_s0 }
 0x1c9   :  { %v281_v12 = vpop.permute.xlu0 %280 }
 0x1ca   :  { %4377 = vmatpush3.xpose.msk.msra.mxu1 %vm282_vm2, %v281_v12 }
 0x1cb   :  { %4381 = vmatprep.subr.mxu1 %v5026_v6 }
 0x1cd   :  { %4379 = vmatmul.mubr.msk.f32.vlgmr.msra.gmra.mxu1 %vm282_vm2, %v5216_v10  ;;  %v359_v13 = vpop.permute.xlu0 %358 }
 0x1ce   :  { %4382 = vmatpush3.xpose.msk.msra.mxu1 %vm282_vm2, %v359_v13  ;;  %4383 = vmatprep.mubr.msk.f32.mxu1 %vm5027_vm1, %v5026_v6 }
 0x1cf   :  { %4391 = vmatprep.subr.mxu1 %v5026_v6 }
 0x1d1   :  { %4384 = vmatmul.mubr.msk.f32.vlgmr.msra.gmra.mxu1 %vm282_vm2, %v5220_v11 }
 0x1d2   :  { %4393 = vmatprep.mubr.msk.f32.mxu1 %vm5027_vm1, %v5026_v6 }
 0x28d   :  { %v353_v14 = vpop.f32.mrf.mxu1 }
 0x28e   :  { %v434_v15 = vmul.f32 0.5, %v353_v14 }
 0x28f   :  { %v4380_v16 = vpop.f32.mrf.mxu1 }
 0x290   :  { %v437_v17 = vsel %vm436_vm3, %v434_v15, -inf }
 0x291   :  { %438 = vmax.xlane.f32.xlu1 %v437_v17  ;;  %v430_v18 = vpop.f32.mrf.mxu1 }
 0x292   :  { %v435_v19 = vmul.f32 0.5, %v430_v18 }
 0x293   :  { %v4385_v20 = vpop.f32.mrf.mxu1 }
 0x294   :  { %v440_v21 = vsel %vm436_vm3, %v435_v19, -inf }
 0x295   :  { %441 = vmax.xlane.f32.xlu1 %v440_v21 }
 0x2a6   :  { %459 = vrot.lane.b32.xlu1 %v5216_v10, %s5029_s10 }
 0x2aa   :  { %535 = vrot.lane.b32.xlu1 %v5220_v11, %s5029_s10  ;;  %s5048_s10 = smov 68  }
 0x2ae   :  { %613 = vrot.lane.b32.xlu1 %v5216_v10, %s5030_s29 }
 0x2b2   :  { %691 = vrot.lane.b32.xlu1 %v5220_v11, %s5030_s29  ;;  %s5049_s29 = smov 100  }
 0x31a   :  { %v439_v22 = vpop.xlane.xlu1 %438 }
 0x31b   :  { %v443_v23 = vsub.f32 %v434_v15, %v439_v22 }
 0x31d   :  { %v445_v24 = vmul.f32 1.442695, %v443_v23 }
 0x31e   :  { %v442_v25 = vpop.xlane.xlu1 %441 }
 0x31f   :  { %4636 = vpow2.f32 %v445_v24  ;;  %v444_v26 = vsub.f32 %v435_v19, %v442_v25 }
 0x321   :  { %v447_v27 = vmul.f32 1.442695, %v444_v26 }
 0x322   :  { %v460_v28 = vpop.permute.xlu1 %459 }
 0x323   :  { %4638 = vpow2.f32 %v447_v27  ;;  %4387 = vmatpush3.msra.mxu0 %v460_v28 }
 0x324   :  { %4396 = vmatprep.subr.mxu0 %v5026_v6 }
 0x326   :  { %v536_v29 = vpop.permute.xlu1 %535 }
 0x327   :  { %4392 = vmatpush3.msra.mxu1 %v536_v29 }
 0x328   :  { %4401 = vmatprep.subr.mxu1 %v5026_v6 }
 0x32a   :  { %v614_v34 = vpop.permute.xlu1 %613 }
 0x32c   :  { %v4637_v30 = vpop.eup %4636 }
 0x32d   :  { %v449_v31 = vsel %vm436_vm3, %v4637_v30, 0.0 }
 0x32e   :  { %450 = vadd.xlane.f32.xlu0 %v449_v31  ;;  %v692_v35 = vpop.permute.xlu1 %691 }
 0x330   :  { %v4639_v32 = vpop.eup %4638 }
 0x331   :  { %v452_v33 = vsel %vm436_vm3, %v4639_v32, 0.0 }
 0x332   :  { %453 = vadd.xlane.f32.xlu1 %v452_v33 }
 0x343   :  { %689 = vrot.lane.b32.xlu1 %v5220_v11, %s5031_s6 }
 0x344   :  { %611 = vrot.lane.b32.xlu0 %v5216_v10, %s5031_s6  ;;  %s5050_s6 = smov 36  }
 0x3b7   :  { %v451_v36 = vpop.xlane.xlu0 %450 }
 0x3b8   :  { %4640 = vrcp.f32 %v451_v36 }
 0x3bb   :  { %v454_v37 = vpop.xlane.xlu1 %453  ;;  %v612_v42 = vpop.permute.xlu0 %611 }
 0x3bc   :  { %4642 = vrcp.f32 %v454_v37 }
 0x3bf   :  { %v690_v43 = vpop.permute.xlu1 %689 }
 0x3c5   :  { %v4641_v38 = vpop.eup %4640 }
 0x3c6   :  { %v457_v39 = vmul.f32 %v4641_v38, %v4637_v30 }
 0x3c8   :  { %4389 = vmatmul.mubr.msk.f32.vlgmr.msra.gmra.mxu0 %vm436_vm3, %v457_v39 }
 0x3c9   :  { %v4643_v40 = vpop.eup %4642  ;;  %4397 = vmatpush3.xpose.msk.msra.mxu0 %vm282_vm2, %v614_v34  ;;  %4398 = vmatprep.mubr.msk.f32.mxu0 %vm5027_vm1, %v5026_v6 }
 0x3ca   :  { %v458_v41 = vmul.f32 %v4643_v40, %v4639_v32  ;;  %4406 = vmatprep.subr.mxu0 %v5026_v6 }
 0x3cc   :  { %4394 = vmatmul.mubr.msk.f32.vlgmr.msra.gmra.mxu1 %vm436_vm3, %v458_v41  ;;  %4399 = vmatmul.mubr.msk.f32.vlgmr.msra.gmra.mxu0 %vm282_vm2, %v612_v42 }
 0x3cd   :  { %4402 = vmatpush3.xpose.msk.msra.mxu1 %vm282_vm2, %v692_v35  ;;  %4403 = vmatprep.mubr.msk.f32.mxu1 %vm5027_vm1, %v5026_v6 }
 0x3ce   :  { %4411 = vmatprep.subr.mxu1 %v5026_v6  ;;  %4408 = vmatprep.mubr.msk.f32.mxu0 %vm5027_vm1, %v5026_v6 }
 0x3d0   :  { %4404 = vmatmul.mubr.msk.f32.vlgmr.msra.gmra.mxu1 %vm282_vm2, %v690_v43 }
 0x3d1   :  { %4413 = vmatprep.mubr.msk.f32.mxu1 %vm5027_vm1, %v5026_v6 }
 0x488   :  { %v5264_v44 = vpop.f32.mrf.mxu0 }
 0x48a   :  { %v4390_v45 = vpop.f32.mrf.mxu0 }
 0x48c   :  { %v5266_v46 = vpop.f32.mrf.mxu1  ;;  %v685_v47 = vpop.f32.mrf.mxu0 }
 0x48d   :  { %v767_v48 = vmul.f32 0.5, %v685_v47 }
 0x48e   :  { %v4395_v49 = vpop.f32.mrf.mxu1  ;;  %v4400_v50 = vpop.f32.mrf.mxu0 }
 0x48f   :  { %v769_v51 = vsel %vm436_vm3, %v767_v48, -inf }
 0x490   :  { %v763_v52 = vpop.f32.mrf.mxu1  ;;  %770 = vmax.xlane.f32.xlu1 %v769_v51 }
 0x491   :  { %v768_v53 = vmul.f32 0.5, %v763_v52 }
 0x492   :  { %v4405_v54 = vpop.f32.mrf.mxu1 }
 0x493   :  { %v772_v55 = vsel %vm436_vm3, %v768_v53, -inf }
 0x494   :  { %773 = vmax.xlane.f32.xlu0 %v772_v55 }
 0x4a1   :  { %791 = vrot.lane.b32.xlu1 %v5216_v10, %s5032_s5 }
 0x4a5   :  { %945 = vrot.lane.b32.xlu1 %v5216_v10, %s5033_s30 }
 0x4a9   :  { %1023 = vrot.lane.b32.xlu1 %v5220_v11, %s5033_s30  ;;  %s5052_s30 = smov 12  }
 0x4aa   :  { %867 = vrot.lane.b32.xlu0 %v5220_v11, %s5032_s5  ;;  %s5051_s5 = smov 4  }
 0x4ae   :  { %943 = vrot.lane.b32.xlu0 %v5216_v10, %s5034_s20 }
 0x519   :  { %v771_v56 = vpop.xlane.xlu1 %770 }
 0x51a   :  { %v775_v57 = vsub.f32 %v767_v48, %v771_v56 }
 0x51c   :  { %v777_v58 = vmul.f32 1.442695, %v775_v57 }
 0x51d   :  { %v792_v59 = vpop.permute.xlu1 %791  ;;  %v774_v60 = vpop.xlane.xlu0 %773 }
 0x51e   :  { %4644 = vpow2.f32 %v777_v58  ;;  %v776_v61 = vsub.f32 %v768_v53, %v774_v60  ;;  %4407 = vmatpush3.msra.mxu0 %v792_v59 }
 0x51f   :  { %4416 = vmatprep.subr.mxu0 %v5026_v6 }
 0x520   :  { %v779_v62 = vmul.f32 1.442695, %v776_v61 }
 0x521   :  { %v868_v63 = vpop.permute.xlu0 %867  ;;  %v946_v4 = vpop.permute.xlu1 %945 }
 0x522   :  { %4646 = vpow2.f32 %v779_v62  ;;  %4412 = vmatpush3.msra.mxu1 %v868_v63 }
 0x523   :  { %4421 = vmatprep.subr.mxu1 %v5026_v6 }
 0x525   :  { %v1024_v5 = vpop.permute.xlu1 %1023  ;;  %v944_v15 = vpop.permute.xlu0 %943 }
 0x52b   :  { %v4645_v0 = vpop.eup %4644 }
 0x52c   :  { %v781_v1 = vsel %vm436_vm3, %v4645_v0, 0.0 }
 0x52d   :  { %782 = vadd.xlane.f32.xlu1 %v781_v1 }
 0x52f   :  { %v4647_v2 = vpop.eup %4646 }
 0x530   :  { %v784_v3 = vsel %vm436_vm3, %v4647_v2, 0.0 }
 0x531   :  { %785 = vadd.xlane.f32.xlu1 %v784_v3 }
 0x542   :  { %1021 = vrot.lane.b32.xlu1 %v5220_v11, %s5034_s20  ;;  %s5053_s20 = smov 20  }
 0x5b6   :  { %v783_v7 = vpop.xlane.xlu1 %782 }
 0x5b7   :  { %4648 = vrcp.f32 %v783_v7 }
 0x5ba   :  { %v786_v8 = vpop.xlane.xlu1 %785 }
 0x5bb   :  { %4650 = vrcp.f32 %v786_v8 }
 0x5be   :  { %v1022_v16 = vpop.permute.xlu1 %1021 }
 0x5c4   :  { %v4649_v9 = vpop.eup %4648 }
 0x5c5   :  { %v789_v12 = vmul.f32 %v4649_v9, %v4645_v0 }
 0x5c7   :  { %4409 = vmatmul.mubr.msk.f32.vlgmr.msra.gmra.mxu0 %vm436_vm3, %v789_v12 }
 0x5c8   :  { %v4651_v13 = vpop.eup %4650  ;;  %4417 = vmatpush3.xpose.msk.msra.mxu0 %vm282_vm2, %v946_v4  ;;  %4418 = vmatprep.mubr.msk.f32.mxu0 %vm5027_vm1, %v5026_v6 }
 0x5c9   :  { %v790_v14 = vmul.f32 %v4651_v13, %v4647_v2  ;;  %4426 = vmatprep.subr.mxu0 %v5026_v6 }
 0x5cb   :  { %4414 = vmatmul.mubr.msk.f32.vlgmr.msra.gmra.mxu1 %vm436_vm3, %v790_v14  ;;  %4419 = vmatmul.mubr.msk.f32.vlgmr.msra.gmra.mxu0 %vm282_vm2, %v944_v15 }
 0x5cc   :  { %4422 = vmatpush3.xpose.msk.msra.mxu1 %vm282_vm2, %v1024_v5  ;;  %4423 = vmatprep.mubr.msk.f32.mxu1 %vm5027_vm1, %v5026_v6 }
 0x5cd   :  { %4431 = vmatprep.subr.mxu1 %v5026_v6  ;;  %4428 = vmatprep.mubr.msk.f32.mxu0 %vm5027_vm1, %v5026_v6 }
 0x5cf   :  { %4424 = vmatmul.mubr.msk.f32.vlgmr.msra.gmra.mxu1 %vm282_vm2, %v1022_v16 }
 0x5d0   :  { %4433 = vmatprep.mubr.msk.f32.mxu1 %vm5027_vm1, %v5026_v6 }
 0x687   :  { %v5296_v17 = vpop.f32.mrf.mxu0 }
 0x689   :  { %v4410_v18 = vpop.f32.mrf.mxu0 }
 0x68b   :  { %v5298_v19 = vpop.f32.mrf.mxu1  ;;  %v1017_v20 = vpop.f32.mrf.mxu0 }
 0x68c   :  { %v1099_v21 = vmul.f32 0.5, %v1017_v20 }
 0x68d   :  { %v4415_v22 = vpop.f32.mrf.mxu1  ;;  %v4420_v23 = vpop.f32.mrf.mxu0 }
 0x68e   :  { %v1101_v24 = vsel %vm436_vm3, %v1099_v21, -inf }
 0x68f   :  { %v1095_v25 = vpop.f32.mrf.mxu1  ;;  %1102 = vmax.xlane.f32.xlu0 %v1101_v24 }
 0x690   :  { %v1100_v26 = vmul.f32 0.5, %v1095_v25 }
 0x691   :  { %v4425_v27 = vpop.f32.mrf.mxu1 }
 0x692   :  { %v1104_v28 = vsel %vm436_vm3, %v1100_v26, -inf }
 0x693   :  { %1105 = vmax.xlane.f32.xlu1 %v1104_v28 }
 0x6a4   :  { %1123 = vrot.lane.b32.xlu1 %v5216_v10, %s5035_s21 }
 0x6a5   :  { %1199 = vrot.lane.b32.xlu0 %v5220_v11, %s5035_s21  ;;  %s5054_s21 = smov 24  }
 0x6a8   :  { %1277 = vrot.lane.b32.xlu1 %v5216_v10, %s5036_s8 }
 0x6ac   :  { %1355 = vrot.lane.b32.xlu1 %v5220_v11, %s5036_s8 }
 0x6b0   :  { %1353 = vrot.lane.b32.xlu1 %v5220_v11, %s5037_s22 }
 0x718   :  { %v1103_v29 = vpop.xlane.xlu0 %1102 }
 0x719   :  { %v1107_v30 = vsub.f32 %v1099_v21, %v1103_v29 }
 0x71b   :  { %v1109_v31 = vmul.f32 1.442695, %v1107_v30 }
 0x71c   :  { %v1106_v32 = vpop.xlane.xlu1 %1105  ;;  %v1200_v33 = vpop.permute.xlu0 %1199 }
 0x71d   :  { %4652 = vpow2.f32 %v1109_v31  ;;  %v1108_v34 = vsub.f32 %v1100_v26, %v1106_v32  ;;  %4432 = vmatpush3.msra.mxu1 %v1200_v33 }
 0x71e   :  { %4441 = vmatprep.subr.mxu1 %v5026_v6 }
 0x71f   :  { %v1111_v35 = vmul.f32 1.442695, %v1108_v34 }
 0x720   :  { %v1124_v36 = vpop.permute.xlu1 %1123 }
 0x721   :  { %4654 = vpow2.f32 %v1111_v35  ;;  %4427 = vmatpush3.msra.mxu0 %v1124_v36 }
 0x722   :  { %4436 = vmatprep.subr.mxu0 %v5026_v6 }
 0x724   :  { %v1278_v43 = vpop.permute.xlu1 %1277 }
 0x728   :  { %v1356_v49 = vpop.permute.xlu1 %1355 }
 0x72a   :  { %v4653_v37 = vpop.eup %4652 }
 0x72b   :  { %v1113_v38 = vsel %vm436_vm3, %v4653_v37, 0.0 }
 0x72c   :  { %1114 = vadd.xlane.f32.xlu0 %v1113_v38  ;;  %v1354_v52 = vpop.permute.xlu1 %1353 }
 0x72e   :  { %v4655_v39 = vpop.eup %4654 }
 0x72f   :  { %v1116_v40 = vsel %vm436_vm3, %v4655_v39, 0.0 }
 0x730   :  { %1117 = vadd.xlane.f32.xlu0 %v1116_v40 }
 0x746   :  { %1275 = vrot.lane.b32.xlu0 %v5216_v10, %s5037_s22 }
 0x7b5   :  { %v1115_v41 = vpop.xlane.xlu0 %1114 }
 0x7b6   :  { %4656 = vrcp.f32 %v1115_v41 }
 0x7b9   :  { %v1118_v42 = vpop.xlane.xlu0 %1117 }
 0x7ba   :  { %4658 = vrcp.f32 %v1118_v42 }
 0x7bd   :  { %v1276_v51 = vpop.permute.xlu0 %1275 }
 0x7c3   :  { %v4657_v45 = vpop.eup %4656 }
 0x7c4   :  { %v1121_v47 = vmul.f32 %v4657_v45, %v4653_v37 }
 0x7c6   :  { %4429 = vmatmul.mubr.msk.f32.vlgmr.msra.gmra.mxu0 %vm436_vm3, %v1121_v47 }
 0x7c7   :  { %v4659_v48 = vpop.eup %4658  ;;  %4437 = vmatpush3.xpose.msk.msra.mxu0 %vm282_vm2, %v1278_v43  ;;  %4438 = vmatprep.mubr.msk.f32.mxu0 %vm5027_vm1, %v5026_v6 }
 0x7c8   :  { %v1122_v50 = vmul.f32 %v4659_v48, %v4655_v39  ;;  %4446 = vmatprep.subr.mxu0 %v5026_v6 }
 0x7ca   :  { %4434 = vmatmul.mubr.msk.f32.vlgmr.msra.gmra.mxu1 %vm436_vm3, %v1122_v50  ;;  %4439 = vmatmul.mubr.msk.f32.vlgmr.msra.gmra.mxu0 %vm282_vm2, %v1276_v51 }
 0x7cb   :  { %4442 = vmatpush3.xpose.msk.msra.mxu1 %vm282_vm2, %v1356_v49  ;;  %4443 = vmatprep.mubr.msk.f32.mxu1 %vm5027_vm1, %v5026_v6 }
 0x7cc   :  { %4451 = vmatprep.subr.mxu1 %v5026_v6  ;;  %4448 = vmatprep.mubr.msk.f32.mxu0 %vm5027_vm1, %v5026_v6 }
 0x7ce   :  { %4444 = vmatmul.mubr.msk.f32.vlgmr.msra.gmra.mxu1 %vm282_vm2, %v1354_v52 }
 0x7cf   :  { %4453 = vmatprep.mubr.msk.f32.mxu1 %vm5027_vm1, %v5026_v6 }
 0x886   :  { %v5328_v53 = vpop.f32.mrf.mxu0 }
 0x888   :  { %v4430_v54 = vpop.f32.mrf.mxu0 }
 0x88a   :  { %v5330_v55 = vpop.f32.mrf.mxu1  ;;  %v1349_v56 = vpop.f32.mrf.mxu0 }
 0x88b   :  { %v1431_v57 = vmul.f32 0.5, %v1349_v56 }
 0x88c   :  { %v4435_v58 = vpop.f32.mrf.mxu1  ;;  %v4440_v59 = vpop.f32.mrf.mxu0 }
 0x88d   :  { %v1433_v60 = vsel %vm436_vm3, %v1431_v57, -inf }
 0x88e   :  { %v1427_v61 = vpop.f32.mrf.mxu1  ;;  %1434 = vmax.xlane.f32.xlu0 %v1433_v60 }
 0x88f   :  { %v1432_v62 = vmul.f32 0.5, %v1427_v61 }
 0x890   :  { %v4445_v63 = vpop.f32.mrf.mxu1 }
 0x891   :  { %v1436_v0 = vsel %vm436_vm3, %v1432_v62, -inf }
 0x892   :  { %1437 = vmax.xlane.f32.xlu1 %v1436_v0 }
 0x8a3   :  { %1455 = vrot.lane.b32.xlu1 %v5216_v10, %s5038_s2 }
 0x8a4   :  { %1531 = vrot.lane.b32.xlu0 %v5220_v11, %s5038_s2 }
 0x8a7   :  { %1609 = vrot.lane.b32.xlu1 %v5216_v10, %s5039_s11 }
 0x8ab   :  { %1687 = vrot.lane.b32.xlu1 %v5220_v11, %s5039_s11 }
 0x8af   :  { %1685 = vrot.lane.b32.xlu1 %v5220_v11, %s5040_s23 }
 0x917   :  { %v1435_v1 = vpop.xlane.xlu0 %1434 }
 0x918   :  { %v1439_v2 = vsub.f32 %v1431_v57, %v1435_v1 }
 0x91a   :  { %v1441_v3 = vmul.f32 1.442695, %v1439_v2 }
 0x91b   :  { %v1438_v4 = vpop.xlane.xlu1 %1437  ;;  %v1532_v5 = vpop.permute.xlu0 %1531 }
 0x91c   :  { %4660 = vpow2.f32 %v1441_v3  ;;  %v1440_v7 = vsub.f32 %v1432_v62, %v1438_v4  ;;  %4452 = vmatpush3.msra.mxu1 %v1532_v5 }
 0x91d   :  { %4461 = vmatprep.subr.mxu1 %v5026_v6 }
 0x91e   :  { %v1443_v8 = vmul.f32 1.442695, %v1440_v7 }
 0x91f   :  { %v1456_v9 = vpop.permute.xlu1 %1455 }
 0x920   :  { %4662 = vpow2.f32 %v1443_v8  ;;  %4447 = vmatpush3.msra.mxu0 %v1456_v9 }
 0x921   :  { %4456 = vmatprep.subr.mxu0 %v5026_v6 }
 0x923   :  { %v1610_v20 = vpop.permute.xlu1 %1609 }
 0x927   :  { %v1688_v24 = vpop.permute.xlu1 %1687 }
 0x929   :  { %v4661_v12 = vpop.eup %4660 }
 0x92a   :  { %v1445_v13 = vsel %vm436_vm3, %v4661_v12, 0.0 }
 0x92b   :  { %1446 = vadd.xlane.f32.xlu0 %v1445_v13  ;;  %v1686_v27 = vpop.permute.xlu1 %1685 }
 0x92d   :  { %v4663_v14 = vpop.eup %4662 }
 0x92e   :  { %v1448_v15 = vsel %vm436_vm3, %v4663_v14, 0.0 }
 0x92f   :  { %1449 = vadd.xlane.f32.xlu0 %v1448_v15 }
 0x945   :  { %1607 = vrot.lane.b32.xlu0 %v5216_v10, %s5040_s23 }
 0x9b4   :  { %v1447_v16 = vpop.xlane.xlu0 %1446 }
 0x9b5   :  { %4664 = vrcp.f32 %v1447_v16 }
 0x9b8   :  { %v1450_v18 = vpop.xlane.xlu0 %1449 }
 0x9b9   :  { %4666 = vrcp.f32 %v1450_v18 }
 0x9bc   :  { %v1608_v26 = vpop.permute.xlu0 %1607 }
 0x9c2   :  { %v4665_v21 = vpop.eup %4664 }
 0x9c3   :  { %v1453_v22 = vmul.f32 %v4665_v21, %v4661_v12 }
 0x9c5   :  { %4449 = vmatmul.mubr.msk.f32.vlgmr.msra.gmra.mxu0 %vm436_vm3, %v1453_v22 }
 0x9c6   :  { %v4667_v23 = vpop.eup %4666  ;;  %4457 = vmatpush3.xpose.msk.msra.mxu0 %vm282_vm2, %v1610_v20  ;;  %4458 = vmatprep.mubr.msk.f32.mxu0 %vm5027_vm1, %v5026_v6 }
 0x9c7   :  { %v1454_v25 = vmul.f32 %v4667_v23, %v4663_v14  ;;  %4466 = vmatprep.subr.mxu0 %v5026_v6 }
 0x9c9   :  { %4454 = vmatmul.mubr.msk.f32.vlgmr.msra.gmra.mxu1 %vm436_vm3, %v1454_v25  ;;  %4459 = vmatmul.mubr.msk.f32.vlgmr.msra.gmra.mxu0 %vm282_vm2, %v1608_v26 }
 0x9ca   :  { %4462 = vmatpush3.xpose.msk.msra.mxu1 %vm282_vm2, %v1688_v24  ;;  %4463 = vmatprep.mubr.msk.f32.mxu1 %vm5027_vm1, %v5026_v6 }
 0x9cb   :  { %4471 = vmatprep.subr.mxu1 %v5026_v6  ;;  %4468 = vmatprep.mubr.msk.f32.mxu0 %vm5027_vm1, %v5026_v6 }
 0x9cd   :  { %4464 = vmatmul.mubr.msk.f32.vlgmr.msra.gmra.mxu1 %vm282_vm2, %v1686_v27 }
 0x9ce   :  { %4473 = vmatprep.mubr.msk.f32.mxu1 %vm5027_vm1, %v5026_v6 }
 0xa85   :  { %v5362_v28 = vpop.f32.mrf.mxu0 }
 0xa87   :  { %v4450_v29 = vpop.f32.mrf.mxu0 }
 0xa89   :  { %v5364_v30 = vpop.f32.mrf.mxu1  ;;  %v1681_v31 = vpop.f32.mrf.mxu0 }
 0xa8a   :  { %v1763_v32 = vmul.f32 0.5, %v1681_v31 }
 0xa8b   :  { %v4455_v33 = vpop.f32.mrf.mxu1  ;;  %v4460_v34 = vpop.f32.mrf.mxu0 }
 0xa8c   :  { %v1765_v35 = vsel %vm436_vm3, %v1763_v32, -inf }
 0xa8d   :  { %v1759_v36 = vpop.f32.mrf.mxu1  ;;  %1766 = vmax.xlane.f32.xlu0 %v1765_v35 }
 0xa8e   :  { %v1764_v37 = vmul.f32 0.5, %v1759_v36 }
 0xa8f   :  { %v4465_v38 = vpop.f32.mrf.mxu1 }
 0xa90   :  { %v1768_v39 = vsel %vm436_vm3, %v1764_v37, -inf }
 0xa91   :  { %1769 = vmax.xlane.f32.xlu1 %v1768_v39 }
 0xaa2   :  { %1787 = vrot.lane.b32.xlu1 %v5216_v10, %s5041_s24 }
 0xaa3   :  { %1863 = vrot.lane.b32.xlu0 %v5220_v11, %s5041_s24 }
 0xaa6   :  { %1941 = vrot.lane.b32.xlu1 %v5216_v10, %s5042_s27 }
 0xaaa   :  { %2019 = vrot.lane.b32.xlu1 %v5220_v11, %s5042_s27 }
 0xaae   :  { %2017 = vrot.lane.b32.xlu1 %v5220_v11, %s5043_s7 }
 0xb16   :  { %v1767_v40 = vpop.xlane.xlu0 %1766 }
 0xb17   :  { %v1771_v41 = vsub.f32 %v1763_v32, %v1767_v40 }
 0xb19   :  { %v1773_v42 = vmul.f32 1.442695, %v1771_v41 }
 0xb1a   :  { %v1770_v43 = vpop.xlane.xlu1 %1769  ;;  %v1864_v45 = vpop.permute.xlu0 %1863 }
 0xb1b   :  { %4668 = vpow2.f32 %v1773_v42  ;;  %v1772_v47 = vsub.f32 %v1764_v37, %v1770_v43  ;;  %4472 = vmatpush3.msra.mxu1 %v1864_v45 }
 0xb1c   :  { %4481 = vmatprep.subr.mxu1 %v5026_v6 }
 0xb1d   :  { %v1775_v48 = vmul.f32 1.442695, %v1772_v47 }
 0xb1e   :  { %v1788_v49 = vpop.permute.xlu1 %1787 }
 0xb1f   :  { %4670 = vpow2.f32 %v1775_v48  ;;  %4467 = vmatpush3.msra.mxu0 %v1788_v49 }
 0xb20   :  { %4476 = vmatprep.subr.mxu0 %v5026_v6 }
 0xb22   :  { %v1942_v58 = vpop.permute.xlu1 %1941 }
 0xb26   :  { %v2020_v62 = vpop.permute.xlu1 %2019 }
 0xb28   :  { %v4669_v50 = vpop.eup %4668 }
 0xb29   :  { %v1777_v51 = vsel %vm436_vm3, %v4669_v50, 0.0 }
 0xb2a   :  { %1778 = vadd.xlane.f32.xlu0 %v1777_v51  ;;  %v2018_v1 = vpop.permute.xlu1 %2017 }
 0xb2c   :  { %v4671_v52 = vpop.eup %4670 }
 0xb2d   :  { %v1780_v54 = vsel %vm436_vm3, %v4671_v52, 0.0 }
 0xb2e   :  { %1781 = vadd.xlane.f32.xlu0 %v1780_v54 }
 0xb44   :  { %1939 = vrot.lane.b32.xlu0 %v5216_v10, %s5043_s7 }
 0xbb3   :  { %v1779_v56 = vpop.xlane.xlu0 %1778 }
 0xbb4   :  { %4672 = vrcp.f32 %v1779_v56 }
 0xbb7   :  { %v1782_v57 = vpop.xlane.xlu0 %1781 }
 0xbb8   :  { %4674 = vrcp.f32 %v1782_v57 }
 0xbbb   :  { %v1940_v0 = vpop.permute.xlu0 %1939 }
 0xbc1   :  { %v4673_v59 = vpop.eup %4672 }
 0xbc2   :  { %v1785_v60 = vmul.f32 %v4673_v59, %v4669_v50 }
 0xbc4   :  { %4469 = vmatmul.mubr.msk.f32.vlgmr.msra.gmra.mxu0 %vm436_vm3, %v1785_v60 }
 0xbc5   :  { %v4675_v61 = vpop.eup %4674  ;;  %4477 = vmatpush3.xpose.msk.msra.mxu0 %vm282_vm2, %v1942_v58  ;;  %4478 = vmatprep.mubr.msk.f32.mxu0 %vm5027_vm1, %v5026_v6 }
 0xbc6   :  { %v1786_v63 = vmul.f32 %v4675_v61, %v4671_v52  ;;  %4486 = vmatprep.subr.mxu0 %v5026_v6 }
 0xbc8   :  { %4474 = vmatmul.mubr.msk.f32.vlgmr.msra.gmra.mxu1 %vm436_vm3, %v1786_v63  ;;  %4479 = vmatmul.mubr.msk.f32.vlgmr.msra.gmra.mxu0 %vm282_vm2, %v1940_v0 }
 0xbc9   :  { %4482 = vmatpush3.xpose.msk.msra.mxu1 %vm282_vm2, %v2020_v62  ;;  %4483 = vmatprep.mubr.msk.f32.mxu1 %vm5027_vm1, %v5026_v6 }
 0xbca   :  { %4491 = vmatprep.subr.mxu1 %v5026_v6  ;;  %4488 = vmatprep.mubr.msk.f32.mxu0 %vm5027_vm1, %v5026_v6 }
 0xbcc   :  { %4484 = vmatmul.mubr.msk.f32.vlgmr.msra.gmra.mxu1 %vm282_vm2, %v2018_v1 }
 0xbcd   :  { %4493 = vmatprep.mubr.msk.f32.mxu1 %vm5027_vm1, %v5026_v6 }
 0xc84   :  { %v5394_v2 = vpop.f32.mrf.mxu0 }
 0xc86   :  { %v4470_v3 = vpop.f32.mrf.mxu0 }
 0xc88   :  { %v5396_v4 = vpop.f32.mrf.mxu1  ;;  %v2013_v5 = vpop.f32.mrf.mxu0 }
 0xc89   :  { %v2095_v7 = vmul.f32 0.5, %v2013_v5 }
 0xc8a   :  { %v4475_v8 = vpop.f32.mrf.mxu1  ;;  %v4480_v9 = vpop.f32.mrf.mxu0 }
 0xc8b   :  { %v2097_v12 = vsel %vm436_vm3, %v2095_v7, -inf }
 0xc8c   :  { %v2091_v13 = vpop.f32.mrf.mxu1  ;;  %2098 = vmax.xlane.f32.xlu0 %v2097_v12 }
 0xc8d   :  { %v2096_v14 = vmul.f32 0.5, %v2091_v13 }
 0xc8e   :  { %v4485_v15 = vpop.f32.mrf.mxu1 }
 0xc8f   :  { %v2100_v16 = vsel %vm436_vm3, %v2096_v14, -inf }
 0xc90   :  { %2101 = vmax.xlane.f32.xlu1 %v2100_v16 }
 0xca1   :  { %2119 = vrot.lane.b32.xlu1 %v5216_v10, %s5044_s15 }
 0xca2   :  { %2195 = vrot.lane.b32.xlu0 %v5220_v11, %s5044_s15  ;;  %s5055_s15 = smov 28  }
 0xca5   :  { %2273 = vrot.lane.b32.xlu1 %v5216_v10, %s5045_s4 }
 0xca9   :  { %2351 = vrot.lane.b32.xlu1 %v5220_v11, %s5045_s4 }
 0xcad   :  { %2349 = vrot.lane.b32.xlu1 %v5220_v11, %s5046_s25 }
 0xd15   :  { %v2099_v18 = vpop.xlane.xlu0 %2098 }
 0xd16   :  { %v2103_v20 = vsub.f32 %v2095_v7, %v2099_v18 }
 0xd18   :  { %v2105_v21 = vmul.f32 1.442695, %v2103_v20 }
 0xd19   :  { %v2102_v22 = vpop.xlane.xlu1 %2101  ;;  %v2196_v23 = vpop.permute.xlu0 %2195 }
 0xd1a   :  { %4676 = vpow2.f32 %v2105_v21  ;;  %v2104_v24 = vsub.f32 %v2096_v14, %v2102_v22  ;;  %4492 = vmatpush3.msra.mxu1 %v2196_v23 }
 0xd1b   :  { %4501 = vmatprep.subr.mxu1 %v5026_v6 }
 0xd1c   :  { %v2107_v25 = vmul.f32 1.442695, %v2104_v24 }
 0xd1d   :  { %v2120_v26 = vpop.permute.xlu1 %2119 }
 0xd1e   :  { %4678 = vpow2.f32 %v2107_v25  ;;  %4487 = vmatpush3.msra.mxu0 %v2120_v26 }
 0xd1f   :  { %4496 = vmatprep.subr.mxu0 %v5026_v6 }
 0xd21   :  { %v2274_v35 = vpop.permute.xlu1 %2273 }
 0xd25   :  { %v2352_v39 = vpop.permute.xlu1 %2351 }
 0xd27   :  { %v4677_v27 = vpop.eup %4676 }
 0xd28   :  { %v2109_v29 = vsel %vm436_vm3, %v4677_v27, 0.0 }
 0xd29   :  { %2110 = vadd.xlane.f32.xlu0 %v2109_v29  ;;  %v2350_v42 = vpop.permute.xlu1 %2349 }
 0xd2b   :  { %v4679_v31 = vpop.eup %4678 }
 0xd2c   :  { %v2112_v32 = vsel %vm436_vm3, %v4679_v31, 0.0 }
 0xd2d   :  { %2113 = vadd.xlane.f32.xlu0 %v2112_v32 }
 0xd43   :  { %2271 = vrot.lane.b32.xlu0 %v5216_v10, %s5046_s25 }
 0xdb2   :  { %v2111_v33 = vpop.xlane.xlu0 %2110 }
 0xdb3   :  { %4680 = vrcp.f32 %v2111_v33 }
 0xdb6   :  { %v2114_v34 = vpop.xlane.xlu0 %2113 }
 0xdb7   :  { %4682 = vrcp.f32 %v2114_v34 }
 0xdba   :  { %v2272_v41 = vpop.permute.xlu0 %2271 }
 0xdc0   :  { %v4681_v36 = vpop.eup %4680 }
 0xdc1   :  { %v2117_v37 = vmul.f32 %v4681_v36, %v4677_v27 }
 0xdc3   :  { %4489 = vmatmul.mubr.msk.f32.vlgmr.msra.gmra.mxu0 %vm436_vm3, %v2117_v37 }
 0xdc4   :  { %v4683_v38 = vpop.eup %4682  ;;  %4497 = vmatpush3.xpose.msk.msra.mxu0 %vm282_vm2, %v2274_v35  ;;  %4498 = vmatprep.mubr.msk.f32.mxu0 %vm5027_vm1, %v5026_v6 }
 0xdc5   :  { %v2118_v40 = vmul.f32 %v4683_v38, %v4679_v31  ;;  %4506 = vmatprep.subr.mxu0 %v5026_v6 }
 0xdc7   :  { %4494 = vmatmul.mubr.msk.f32.vlgmr.msra.gmra.mxu1 %vm436_vm3, %v2118_v40  ;;  %4499 = vmatmul.mubr.msk.f32.vlgmr.msra.gmra.mxu0 %vm282_vm2, %v2272_v41 }
 0xdc8   :  { %4502 = vmatpush3.xpose.msk.msra.mxu1 %vm282_vm2, %v2352_v39  ;;  %4503 = vmatprep.mubr.msk.f32.mxu1 %vm5027_vm1, %v5026_v6 }
 0xdc9   :  { %4511 = vmatprep.subr.mxu1 %v5026_v6  ;;  %4508 = vmatprep.mubr.msk.f32.mxu0 %vm5027_vm1, %v5026_v6 }
 0xdcb   :  { %4504 = vmatmul.mubr.msk.f32.vlgmr.msra.gmra.mxu1 %vm282_vm2, %v2350_v42 }
 0xdcc   :  { %4513 = vmatprep.mubr.msk.f32.mxu1 %vm5027_vm1, %v5026_v6 }
 0xe83   :  { %v5426_v43 = vpop.f32.mrf.mxu0 }
 0xe85   :  { %v4490_v45 = vpop.f32.mrf.mxu0 }
 0xe87   :  { %v5428_v47 = vpop.f32.mrf.mxu1  ;;  %v2345_v48 = vpop.f32.mrf.mxu0 }
 0xe88   :  { %v2427_v49 = vmul.f32 0.5, %v2345_v48 }
 0xe89   :  { %v4495_v50 = vpop.f32.mrf.mxu1  ;;  %v4500_v51 = vpop.f32.mrf.mxu0 }
 0xe8a   :  { %v2429_v52 = vsel %vm436_vm3, %v2427_v49, -inf  ;;  %v3010_v51 = vld [vmem:[%s5776_s3] sm:$0xff] }
 0xe8b   :  { %v2423_v54 = vpop.f32.mrf.mxu1  ;;  %2430 = vmax.xlane.f32.xlu0 %v2429_v52 }
 0xe8c   :  { %v2428_v56 = vmul.f32 0.5, %v2423_v54 }
 0xe8d   :  { %v4505_v57 = vpop.f32.mrf.mxu1 }
 0xe8e   :  { %v2432_v58 = vsel %vm436_vm3, %v2428_v56, -inf }
 0xe8f   :  { %2433 = vmax.xlane.f32.xlu1 %v2432_v58 }
 0xea0   :  { %2451 = vrot.lane.b32.xlu1 %v5216_v10, %s5047_s26 }
 0xea1   :  { %2527 = vrot.lane.b32.xlu0 %v5220_v11, %s5047_s26 }
 0xea4   :  { %2605 = vrot.lane.b32.xlu1 %v5216_v10, %s5048_s10 }
 0xea8   :  { %2683 = vrot.lane.b32.xlu1 %v5220_v11, %s5048_s10 }
 0xeac   :  { %2681 = vrot.lane.b32.xlu1 %v5220_v11, %s5049_s29 }
 0xf14   :  { %v2431_v59 = vpop.xlane.xlu0 %2430 }
 0xf15   :  { %v2435_v60 = vsub.f32 %v2427_v49, %v2431_v59 }
 0xf17   :  { %v2437_v61 = vmul.f32 1.442695, %v2435_v60 }
 0xf18   :  { %v2434_v62 = vpop.xlane.xlu1 %2433  ;;  %v2528_v63 = vpop.permute.xlu0 %2527 }
 0xf19   :  { %4684 = vpow2.f32 %v2437_v61  ;;  %v2436_v0 = vsub.f32 %v2428_v56, %v2434_v62  ;;  %4512 = vmatpush3.msra.mxu1 %v2528_v63 }
 0xf1a   :  { %4521 = vmatprep.subr.mxu1 %v5026_v6 }
 0xf1b   :  { %v2439_v1 = vmul.f32 1.442695, %v2436_v0 }
 0xf1c   :  { %v2452_v3 = vpop.permute.xlu1 %2451 }
 0xf1d   :  { %4686 = vpow2.f32 %v2439_v1  ;;  %4507 = vmatpush3.msra.mxu0 %v2452_v3 }
 0xf1e   :  { %4516 = vmatprep.subr.mxu0 %v5026_v6 }
 0xf20   :  { %v2606_v14 = vpop.permute.xlu1 %2605 }
 0xf24   :  { %v2684_v20 = vpop.permute.xlu1 %2683 }
 0xf26   :  { %v4685_v5 = vpop.eup %4684 }
 0xf27   :  { %v2441_v7 = vsel %vm436_vm3, %v4685_v5, 0.0 }
 0xf28   :  { %2442 = vadd.xlane.f32.xlu0 %v2441_v7  ;;  %v2682_v23 = vpop.permute.xlu1 %2681 }
 0xf2a   :  { %v4687_v8 = vpop.eup %4686 }
 0xf2b   :  { %v2444_v9 = vsel %vm436_vm3, %v4687_v8, 0.0 }
 0xf2c   :  { %2445 = vadd.xlane.f32.xlu0 %v2444_v9 }
 0xf42   :  { %2603 = vrot.lane.b32.xlu0 %v5216_v10, %s5049_s29 }
 0xfb1   :  { %v2443_v12 = vpop.xlane.xlu0 %2442 }
 0xfb2   :  { %4688 = vrcp.f32 %v2443_v12 }
 0xfb5   :  { %v2446_v13 = vpop.xlane.xlu0 %2445 }
 0xfb6   :  { %4690 = vrcp.f32 %v2446_v13 }
 0xfb9   :  { %v2604_v22 = vpop.permute.xlu0 %2603 }
 0xfbf   :  { %v4689_v15 = vpop.eup %4688 }
 0xfc0   :  { %v2449_v16 = vmul.f32 %v4689_v15, %v4685_v5 }
 0xfc2   :  { %4509 = vmatmul.mubr.msk.f32.vlgmr.msra.gmra.mxu0 %vm436_vm3, %v2449_v16 }
 0xfc3   :  { %v4691_v18 = vpop.eup %4690  ;;  %4517 = vmatpush3.xpose.msk.msra.mxu0 %vm282_vm2, %v2606_v14  ;;  %4518 = vmatprep.mubr.msk.f32.mxu0 %vm5027_vm1, %v5026_v6 }
 0xfc4   :  { %v2450_v21 = vmul.f32 %v4691_v18, %v4687_v8  ;;  %4526 = vmatprep.subr.mxu0 %v5026_v6 }
 0xfc6   :  { %4514 = vmatmul.mubr.msk.f32.vlgmr.msra.gmra.mxu1 %vm436_vm3, %v2450_v21  ;;  %4519 = vmatmul.mubr.msk.f32.vlgmr.msra.gmra.mxu0 %vm282_vm2, %v2604_v22 }
 0xfc7   :  { %4522 = vmatpush3.xpose.msk.msra.mxu1 %vm282_vm2, %v2684_v20  ;;  %4523 = vmatprep.mubr.msk.f32.mxu1 %vm5027_vm1, %v5026_v6 }
 0xfc8   :  { %4531 = vmatprep.subr.mxu1 %v5026_v6  ;;  %4528 = vmatprep.mubr.msk.f32.mxu0 %vm5027_vm1, %v5026_v6 }
 0xfca   :  { %4524 = vmatmul.mubr.msk.f32.vlgmr.msra.gmra.mxu1 %vm282_vm2, %v2682_v23 }
 0xfcb   :  { %4533 = vmatprep.mubr.msk.f32.mxu1 %vm5027_vm1, %v5026_v6  ;;  %vm4169_vm1 = vcmask 474112  }
0x1082   :  { %v2523_v24 = vpop.f32.mrf.mxu0 }
0x1084   :  { %v4510_v25 = vpop.f32.mrf.mxu0 }
0x1086   :  { %v2599_v26 = vpop.f32.mrf.mxu1  ;;  %v2677_v27 = vpop.f32.mrf.mxu0 }
0x1087   :  { %v2759_v29 = vmul.f32 0.5, %v2677_v27 }
0x1088   :  { %v4515_v31 = vpop.f32.mrf.mxu1  ;;  %v4520_v32 = vpop.f32.mrf.mxu0 }
0x1089   :  { %v2761_v33 = vsel %vm436_vm3, %v2759_v29, -inf }
0x108a   :  { %v2755_v34 = vpop.f32.mrf.mxu1  ;;  %2762 = vmax.xlane.f32.xlu0 %v2761_v33  ;;  %v4776_v33 = vld [vmem:[#allocation2 + $0x8] sm:$0xff] }
0x108b   :  { %v2760_v35 = vmul.f32 0.5, %v2755_v34 }
0x108c   :  { %v4525_v36 = vpop.f32.mrf.mxu1 }
0x108d   :  { %v2764_v37 = vsel %vm436_vm3, %v2760_v35, -inf }
0x108e   :  { %2765 = vmax.xlane.f32.xlu1 %v2764_v37  ;;  %v4777_v37 = vld [vmem:[#allocation2] sm:$0xff] }
0x109f   :  { %2783 = vrot.lane.b32.xlu1 %v5216_v10, %s5050_s6 }
0x10a3   :  { %2937 = vrot.lane.b32.xlu1 %v5296_v17, %s5051_s5 }
0x10a7   :  { %2939 = vrot.lane.b32.xlu1 %v5298_v19, %s5051_s5 }
0x10ab   :  { %2947 = vrot.lane.b32.xlu1 %v5330_v55, %s5017_s19 }
0x10af   :  { %2955 = vrot.lane.b32.xlu1 %v5364_v30, %s5052_s30 }
0x10b3   :  { %2963 = vrot.lane.b32.xlu1 %v5396_v4, %s5024_s1 }
0x10b7   :  { %2971 = vrot.lane.b32.xlu1 %v5428_v47, %s5053_s20 }
0x10bb   :  { %2979 = vrot.lane.b32.xlu1 %v2599_v26, %s5054_s21 }
0x1113   :  { %v2763_v10 = vpop.xlane.xlu0 %2762 }
0x1114   :  { %v2767_v38 = vsub.f32 %v2759_v29, %v2763_v10 }
0x1116   :  { %v2769_v17 = vmul.f32 1.442695, %v2767_v38 }
0x1117   :  { %v2766_v39 = vpop.xlane.xlu1 %2765 }
0x1118   :  { %4692 = vpow2.f32 %v2769_v17  ;;  %v2768_v19 = vsub.f32 %v2760_v35, %v2766_v39 }
0x111a   :  { %v2771_v40 = vmul.f32 1.442695, %v2768_v19 }
0x111b   :  { %v2784_v41 = vpop.permute.xlu1 %2783 }
0x111c   :  { %4694 = vpow2.f32 %v2771_v40  ;;  %4527 = vmatpush3.msra.mxu0 %v2784_v41 }
0x111f   :  { %v2938_v58 = vpop.permute.xlu1 %2937 }
0x1120   :  { %v2991_v7 = vsel %vm282_vm2, %v5264_v44, %v2938_v58 }
0x1123   :  { %v2940_v59 = vpop.permute.xlu1 %2939 }
0x1124   :  { %v2992_v14 = vsel %vm282_vm2, %v5266_v46, %v2940_v59  ;;  %v4247_v46 = vld [vmem:[#allocation7] ss:$0 sm:$0xff] }
0x1125   :  { %v4693_v55 = vpop.eup %4692 }
0x1126   :  { %v2773_v30 = vsel %vm436_vm3, %v4693_v55, 0.0 }
0x1127   :  { %2774 = vadd.xlane.f32.xlu0 %v2773_v30  ;;  %v2948_v61 = vpop.permute.xlu1 %2947 }
0x1128   :  { %v2994_v16 = vsel %vm436_vm3, %v2992_v14, %v2948_v61 }
0x1129   :  { %v4695_v4 = vpop.eup %4694 }
0x112a   :  { %v2776_v42 = vsel %vm436_vm3, %v4695_v4, 0.0 }
0x112b   :  { %2777 = vadd.xlane.f32.xlu0 %v2776_v42  ;;  %v2956_v63 = vpop.permute.xlu1 %2955 }
0x112c   :  { %v2997_v21 = vsel %vm2995_vm4, %v2994_v16, %v2956_v63 }
0x112f   :  { %v2964_v1 = vpop.permute.xlu1 %2963 }
0x1130   :  { %v3000_v23 = vsel %vm2998_vm5, %v2997_v21, %v2964_v1  ;;  %v3245_v1 = vld [vmem:[%s5782_s9 + $0x10] sm:$0xff]  ;;  %v3338_v21 = vld [vmem:[#allocation16 + $0x8] sm:$0xff] }
0x1133   :  { %v2972_v5 = vpop.permute.xlu1 %2971 }
0x1137   :  { %v2980_v18 = vpop.permute.xlu1 %2979 }
0x1141   :  { %2859 = vrot.lane.b32.xlu0 %v5220_v11, %s5050_s6 }
0x1145   :  { %2945 = vrot.lane.b32.xlu0 %v5328_v53, %s5017_s19 }
0x1149   :  { %2953 = vrot.lane.b32.xlu0 %v5362_v28, %s5052_s30  ;;  %v3013_v28 = vld [vmem:[%s5776_s3 + $0x18] sm:$0xff] }
0x114a   :  { %4536 = vmatprep.subr.mxu0 %v3013_v28 }
0x114d   :  { %2961 = vrot.lane.b32.xlu0 %v5394_v2, %s5024_s1  ;;  %v3012_v2 = vld [vmem:[%s5776_s3 + $0x10] sm:$0xff] }
0x1151   :  { %2969 = vrot.lane.b32.xlu0 %v5426_v43, %s5053_s20  ;;  %v3011_v43 = vld [vmem:[%s5776_s3 + $0x8] sm:$0xff] }
0x1155   :  { %2977 = vrot.lane.b32.xlu0 %v2523_v24, %s5054_s21  ;;  %v3003_v24 = vsel %vm3001_vm6, %v3000_v23, %v2972_v5  ;;  %v3243_v5 = vld [vmem:[%s5782_s9] sm:$0xff]  ;;  %v3953_v23 = vld [vmem:[#allocation17 + $0x18] sm:$0xff] }
0x1156   :  { %v3006_v25 = vsel %vm3004_vm8, %v3003_v24, %v2980_v18  ;;  %v3848_v18 = vld [vmem:[%s5786_s13] sm:$0xff] }
0x11b0   :  { %v2775_v45 = vpop.xlane.xlu0 %2774 }
0x11b1   :  { %4696 = vrcp.f32 %v2775_v45 }
0x11b4   :  { %v2778_v47 = vpop.xlane.xlu0 %2777 }
0x11b5   :  { %4698 = vrcp.f32 %v2778_v47  ;;  %v3152_v47 = vld [vmem:[#allocation11 + $0x18] sm:$0xff] }
0x11b8   :  { %v2860_v48 = vpop.permute.xlu0 %2859 }
0x11b9   :  { %4532 = vmatpush3.msra.mxu1 %v2860_v48  ;;  %v3151_v48 = vld [vmem:[#allocation11 + $0x10] sm:$0xff] }
0x11ba   :  { %4547 = vmatprep.subr.mxu1 %v3152_v47 }
0x11bc   :  { %v2946_v60 = vpop.permute.xlu0 %2945 }
0x11bd   :  { %v2993_v8 = vsel %vm436_vm3, %v2991_v7, %v2946_v60  ;;  %v3849_v7 = vld [vmem:[%s5786_s13 + $0x8] sm:$0xff] }
0x11be   :  { %v4697_v49 = vpop.eup %4696 }
0x11bf   :  { %v2781_v50 = vmul.f32 %v4697_v49, %v4693_v55  ;;  %v3150_v49 = vld [vmem:[#allocation11 + $0x8] sm:$0xff] }
0x11c0   :  { %v2954_v62 = vpop.permute.xlu0 %2953 }
0x11c1   :  { %4529 = vmatmul.mubr.msk.f32.vlgmr.msra.gmra.mxu0 %vm436_vm3, %v2781_v50  ;;  %v2996_v12 = vsel %vm2995_vm4, %v2993_v8, %v2954_v62  ;;  %v3149_v50 = vld [vmem:[#allocation11] sm:$0xff] }
0x11c2   :  { %v4699_v11 = vpop.eup %4698  ;;  %4537 = vmatpush3.msra.mxu0 %v3013_v28  ;;  %v4252_v8 = vld [vmem:[#allocation13] ss:$0 sm:$0xff] }
0x11c3   :  { %v2782_v53 = vmul.f32 %v4699_v11, %v4695_v4  ;;  %4538 = vmatprep.subr.mxu0 %v3012_v2 }
0x11c4   :  { %4539 = vmatpush3.msra.mxu0 %v3012_v2  ;;  %v2962_v0 = vpop.permute.xlu0 %2961 }
0x11c5   :  { %4534 = vmatmul.mubr.msk.f32.vlgmr.msra.gmra.mxu1 %vm436_vm3, %v2782_v53  ;;  %4540 = vmatprep.subr.mxu0 %v3011_v43  ;;  %v2999_v13 = vsel %vm2998_vm5, %v2996_v12, %v2962_v0  ;;  %v3246_v0 = vld [vmem:[%s5782_s9 + $0x18] sm:$0xff] }
0x11c6   :  { %4541 = vmatpush3.msra.mxu0 %v3011_v43  ;;  %4548 = vmatpush3.msra.mxu1 %v3152_v47 }
0x11c7   :  { %4542 = vmatprep.subr.mxu0 %v3010_v51  ;;  %4549 = vmatprep.subr.mxu1 %v3151_v48 }
0x11c8   :  { %4543 = vmatpush3.msra.mxu0 %v3010_v51  ;;  %v2970_v3 = vpop.permute.xlu0 %2969  ;;  %4550 = vmatpush3.msra.mxu1 %v3151_v48 }
0x11c9   :  { %v3002_v15 = vsel %vm3001_vm6, %v2999_v13, %v2970_v3  ;;  %4551 = vmatprep.subr.mxu1 %v3150_v49  ;;  %4558 = vmatprep.subr.mxu0 %v3246_v0  ;;  %v3244_v3 = vld [vmem:[%s5782_s9 + $0x8] sm:$0xff] }
0x11ca   :  { %4552 = vmatpush3.msra.mxu1 %v3150_v49 }
0x11cb   :  { %4553 = vmatprep.subr.mxu1 %v3149_v50 }
0x11cc   :  { %v2978_v9 = vpop.permute.xlu0 %2977  ;;  %4554 = vmatpush3.msra.mxu1 %v3149_v50 }
0x11cd   :  { %v3005_v20 = vsel %vm3004_vm8, %v3002_v15, %v2978_v9 }
0x1281   :  { %v2855_v52 = vpop.f32.mrf.mxu0 }
0x1282   :  { %2985 = vrot.lane.b32.xlu0 %v2855_v52, %s5055_s15 }
0x1283   :  { %v4530_v54 = vpop.f32.mrf.mxu0 }
0x1284   :  { %v4250_v54 = vld [vmem:[#allocation8] ss:$0 sm:$0xff] }
0x1285   :  { %v2931_v56 = vpop.f32.mrf.mxu1 }
0x1286   :  { %2987 = vrot.lane.b32.xlu1 %v2931_v56, %s5055_s15 }
0x1287   :  { %v4535_v57 = vpop.f32.mrf.mxu1 }
0x1288   :  { %v4251_v57 = vld [vmem:[#allocation10] ss:$0 sm:$0xff] }
0x12f4   :  { %v2986_v44 = vpop.permute.xlu0 %2985 }
0x12f5   :  { %v3008_v22 = vsel %vm3007_vm7, %v3005_v20, %v2986_v44  ;;  %v3340_v20 = vld [vmem:[#allocation16 + $0x18] sm:$0xff]  ;;  %v3339_v44 = vld [vmem:[#allocation16 + $0x10] sm:$0xff] }
0x12f6   :  { %4544 = vmatprep.mubr.msk.f32.mxu0 %vm197_vm0, %v3008_v22  ;;  %3387 = vmatprep.subr.mxu1 %v3340_v20  ;;  %v3337_v22 = vld [vmem:[#allocation16] sm:$0xff] }
0x12f8   :  { %v2988_v26 = vpop.permute.xlu1 %2987 }
0x12f9   :  { %v3009_v27 = vsel %vm3007_vm7, %v3006_v25, %v2988_v26 }
0x12fa   :  { %4545 = vmatmul.mubr.msk.f32.vlgmr.msra.gmra.mxu0 %vm197_vm0, %v3009_v27  ;;  %v4255_v27 = vld [vmem:[#allocation14] ss:$0 sm:$0xff] }
0x12fb   :  { %4559 = vmatpush3.msra.mxu0 %v3246_v0 }
0x12fc   :  { %4560 = vmatprep.subr.mxu0 %v3245_v1 }
0x12fd   :  { %4561 = vmatpush3.msra.mxu0 %v3245_v1 }
0x12fe   :  { %4562 = vmatprep.subr.mxu0 %v3244_v3 }
0x12ff   :  { %4563 = vmatpush3.msra.mxu0 %v3244_v3 }
0x1300   :  { %4564 = vmatprep.subr.mxu0 %v3243_v5 }
0x1301   :  { %4565 = vmatpush3.msra.mxu0 %v3243_v5 }
0x1302   :  { %4569 = vmatprep.subr.mxu0 %v3849_v7 }
0x13ba   :  { %v4546_v29 = vpop.f32.mrf.mxu0 }
0x13bb   :  { %v3099_v31 = vadd.f32 %v4546_v29, %v4247_v46 }
0x13bc   :  { %v3093_v32 = vpop.f32.mrf.mxu0 }
0x13bd   :  { %v3103_v34 = vadd.f32 %v4776_v33, %v3099_v31  ;;  %v3094_v35 = vadd.f32 %v4247_v46, %v3093_v32  ;;  %v3952_v33 = vld [vmem:[#allocation17 + $0x10] sm:$0xff] }
0x13bf   :  { %v3107_v36 = vsel %vm197_vm0, %v3103_v34, 0.0  ;;  %v3102_v10 = vadd.f32 %v4777_v37, %v3094_v35  ;;  %v3951_v35 = vld [vmem:[#allocation17 + $0x8] sm:$0xff]  ;;  %v3950_v37 = vld [vmem:[#allocation17] sm:$0xff] }
0x13c0   :  { %3108 = vadd.xlane.f32.xlu1 %v3107_v36 }
0x13c1   :  { %v3104_v38 = vsel %vm197_vm0, %v3102_v10, 0.0 }
0x13c2   :  { %3105 = vadd.xlane.f32.xlu0 %v3104_v38  ;;  %v3343_v38 = vlaneseq }
0x1449   :  { %v3109_v17 = vpop.xlane.xlu1 %3108 }
0x144a   :  { %v3112_v39 = vmul.f32 0.03125, %v3109_v17  ;;  %v3344_v17 = vshrl.u32 %v3343_v38, 7 }
0x144b   :  { %v3106_v19 = vpop.xlane.xlu0 %3105 }
0x144c   :  { %v3111_v40 = vmul.f32 0.03125, %v3106_v19  ;;  %v3114_v41 = vsub.f32 %v3103_v34, %v3112_v39  ;;  %v4061_v39 = vand.u32 127, %v3343_v38 }
0x144e   :  { %v3113_v55 = vsub.f32 %v3102_v10, %v3111_v40  ;;  %v3116_v42 = vmul.f32 %v3114_v41, %v3114_v41  ;;  %v5546_v19 = vsub.s32 %v4061_v39, %v3344_v17  ;;  %v4261_v40 = vld [vmem:[%s5787_s14] ss:$0 sm:$0xff]  ;;  %s5056_s14 = smov 78  }
0x1450   :  { %v3115_v30 = vmul.f32 %v3113_v55, %v3113_v55  ;;  %v3120_v45 = vsel %vm197_vm0, %v3116_v42, 0.0  ;;  %v3349_v42 = vsub.s32 1, %v3344_v17 }
0x1452   :  { %v3117_v4 = vsel %vm197_vm0, %v3115_v30, 0.0  ;;  %v3345_v30 = vsub.s32 0, %v3344_v17 }
0x1453   :  { %3118 = vadd.xlane.f32.xlu0 %v3117_v4  ;;  %v3341_v4 = vld [vmem:[%s5785_s12] sm:$0x3]  ;;  %s5057_s12 = smov 106  }
0x1454   :  { %v3350_v47 = vrot.slane %v3341_v4, %v3349_v42 }
0x1457   :  { %3121 = vadd.xlane.f32.xlu0 %v3120_v45  ;;  %v3346_v45 = vrot.slane %v3341_v4, %v3345_v30 }
0x14dc   :  { %v3119_v11 = vpop.xlane.xlu0 %3118 }
0x14dd   :  { %v3123_v53 = vmul.f32 0.03125, %v3119_v11 }
0x14df   :  { %v3125_v28 = vadd.f32 1e-05, %v3123_v53 }
0x14e0   :  { %v3122_v2 = vpop.xlane.xlu0 %3121 }
0x14e1   :  { %4700 = vrsqrt.f32 %v3125_v28  ;;  %v3124_v43 = vmul.f32 0.03125, %v3122_v2 }
0x14e3   :  { %v3126_v51 = vadd.f32 1e-05, %v3124_v43 }
0x14e5   :  { %4702 = vrsqrt.f32 %v3126_v51 }
0x14ee   :  { %v4701_v52 = vpop.eup %4700 }
0x14ef   :  { %v3129_v56 = vmul.f32 %v4701_v52, %v3113_v55  ;;  %v5058_v52 = vmov 1983009808  }
0x14f1   :  { %v3138_v58 = vmul.f32 %v4250_v54, %v3129_v56 }
0x14f2   :  { %v4703_v59 = vpop.eup %4702 }
0x14f3   :  { %v3130_v60 = vmul.f32 %v4703_v59, %v3114_v41  ;;  %v3147_v61 = vadd.f32 %v4251_v57, %v3138_v58  ;;  %v5059_v59 = vmov 1934713408  }
0x14f5   :  { %v3139_v62 = vmul.f32 %v4250_v54, %v3130_v60  ;;  %4555 = vmatprep.mubr.msk.f32.mxu1 %vm197_vm0, %v3147_v61  ;;  %v3467_v54 = vunpack.c.l.s4 %v5058_v52  ;;  %v3499_v60 = vunpack.c.l.s4 %v5059_v59 }
0x14f7   :  { %v3148_v63 = vadd.f32 %v4251_v57, %v3139_v62  ;;  %v3468_v58 = vunpack.c.0.s8 %v3467_v54  ;;  %v3500_v1 = vunpack.c.0.s8 %v3499_v60 }
0x14f9   :  { %4556 = vmatmul.mubr.msk.f32.vlgmr.msra.gmra.mxu1 %vm197_vm0, %v3148_v63  ;;  %v3471_v0 = vsub.s32 %v3468_v58, %v3344_v17 }
0x14fa   :  { %3423 = vmatprep.mubr.f32.mxu1 %v5026_v6  ;;  %3388 = vmatpush1.msra.mxu1 %v3339_v44 }
0x14fb   :  { %3389 = vmatprep.subr.mxu1 %v3338_v21 }
0x14fc   :  { %3390 = vmatpush1.msra.mxu1 %v3337_v22 }
0x14fd   :  { %4576 = vmatprep.subr.mxu1 %v3953_v23 }
0x15b9   :  { %v4557_v9 = vpop.f32.mrf.mxu1 }
0x15ba   :  { %v3238_v12 = vadd.f32 %v4557_v9, %v4252_v8 }
0x15bb   :  { %v3232_v13 = vpop.f32.mrf.mxu1 }
0x15bc   :  { %v3242_v14 = vmax.f32 %v3238_v12, 0.0  ;;  %v3233_v15 = vadd.f32 %v4252_v8, %v3232_v13 }
0x15be   :  { %v3241_v16 = vmax.f32 %v3233_v15, 0.0  ;;  %3859 = vrot.lane.b32.xlu0 %v3242_v14, %s5028_s0  ;;  %v3503_v15 = vsub.s32 %v3500_v1, %v3344_v17 }
0x15c0   :  { %3857 = vrot.lane.b32.xlu1 %v3241_v16, %s5028_s0  ;;  %4566 = vmatprep.mubr.msk.f32.mxu0 %vm197_vm0, %v3241_v16 }
0x15c1   :  { %4567 = vmatmul.mubr.msk.f32.vlgmr.msra.gmra.mxu0 %vm197_vm0, %v3242_v14 }
0x15c2   :  { %4570 = vmatpush3.msra.mxu0 %v3849_v7 }
0x15c3   :  { %4571 = vmatprep.subr.mxu0 %v3848_v18 }
0x15c4   :  { %3961 = vrot.lane.b32.xlu1 %v3241_v16, %s5039_s11  ;;  %4572 = vmatpush3.msra.mxu0 %v3848_v18 }
0x15c8   :  { %3963 = vrot.lane.b32.xlu1 %v3242_v14, %s5039_s11 }
0x1630   :  { %v3860_v25 = vpop.permute.xlu0 %3859 }
0x1632   :  { %v3858_v24 = vpop.permute.xlu1 %3857 }
0x1633   :  { %4573 = vmatprep.mubr.msk.f32.mxu0 %vm2998_vm5, %v3858_v24 }
0x1634   :  { %4574 = vmatmul.mubr.msk.f32.vlgmr.msra.gmra.mxu0 %vm2998_vm5, %v3860_v25 }
0x1636   :  { %v3962_v34 = vpop.permute.xlu1 %3961 }
0x163a   :  { %v3964_v10 = vpop.permute.xlu1 %3963 }
0x1681   :  { %v4568_v26 = vpop.f32.mrf.mxu0 }
0x1682   :  { %v3332_v31 = vadd.f32 %v4568_v26, %v4255_v27 }
0x1683   :  { %v3326_v46 = vpop.f32.mrf.mxu0 }
0x1684   :  { %v3327_v29 = vadd.f32 %v4255_v27, %v3326_v46  ;;  %v3336_v36 = vmax.f32 %v3332_v31, 0.0 }
0x1686   :  { %v3335_v32 = vmax.f32 %v3327_v29, 0.0 }
0x1688   :  { %4258 = vmatmul.mubr.msk.f32.vlgmr.msra.gmra.mxu1 %vm2998_vm5, %v3335_v32 }
0x1689   :  { %4577 = vmatpush3.msra.mxu1 %v3953_v23  ;;  %3429 = vmatprep.mubr.f32.mxu1 %v5026_v6 }
0x168a   :  { %4578 = vmatprep.subr.mxu1 %v3952_v33 }
0x168b   :  { %4579 = vmatpush3.msra.mxu1 %v3952_v33 }
0x168c   :  { %4259 = vmatmul.mubr.msk.f32.gmra.mxu1 %vm2998_vm5, %v3336_v36  ;;  %4580 = vmatprep.subr.mxu1 %v3951_v35 }
0x168d   :  { %4581 = vmatpush3.msra.mxu1 %v3951_v35  ;;  %4584 = vmatprep.mubr.msk.f32.mxu1 %vm197_vm0, %v3962_v34 }
0x168e   :  { %4582 = vmatprep.subr.mxu1 %v3950_v37 }
0x168f   :  { %4583 = vmatpush3.msra.mxu1 %v3950_v37 }
0x1690   :  { %4585 = vmatmul.mubr.msk.f32.vlgmr.msra.gmra.mxu1 %vm197_vm0, %v3964_v10  ;;  %vm4138_vm0 = vcmask 1047559  }
0x16f4   :  { %v4575_v41 = vpop.f32.mrf.mxu0 }
0x16f5   :  { %v5551_v55 = vadd.f32 %v4575_v41, %v4261_v40 }
0x16f6   :  { %v3931_v12 = vpop.f32.mrf.mxu0 }
0x16f7   :  { %v3932_v24 = vadd.f32 %v4261_v40, %v3931_v12 }
0x16f9   :  { %v3940_v35 = vsub.f32 0.0, %v3932_v24 }
0x16fb   :  { %v3942_v4 = vmul.f32 1.442695, %v3940_v35 }
0x16fd   :  { %4704 = vpow2.f32 %v3942_v4 }
0x170a   :  { %v4705_v60 = vpop.eup %4704 }
0x170b   :  { %v3946_v1 = vadd.f32 1.0, %v4705_v60 }
0x170d   :  { %4706 = vrcp.f32 %v3946_v1 }
0x1748   :  { %v3425_v48 = vpop.f32.mrf.mxu1 }
0x1749   :  { %v3426_v49 = vadd.f32 %v3425_v48, %v3346_v45 }
0x174a   :  { %v3427_v50 = vpop.f32.mrf.mxu1 }
0x174b   :  { %v3428_v11 = vadd.f32 %v3427_v50, %v3350_v47  ;;  %3446 = vrot.lane.b32.xlu0 %v3426_v49, %s5055_s15 }
0x174c   :  { %v3431_v53 = vpop.f32.mrf.mxu1 }
0x174d   :  { %3448 = vrot.lane.b32.xlu1 %v3428_v11, %s5055_s15  ;;  %v5558_v28 = vadd.f32 %v3431_v53, %v3346_v45 }
0x174e   :  { %v3433_v2 = vpop.f32.mrf.mxu1 }
0x174f   :  { %3438 = vrot.lane.b32.xlu0 %v3426_v49, %s5056_s14  ;;  %v3434_v43 = vadd.f32 %v3433_v2, %v3350_v47 }
0x1751   :  { %3440 = vrot.lane.b32.xlu1 %v5558_v28, %s5056_s14 }
0x1753   :  { %3450 = vrot.lane.b32.xlu0 %v5558_v28, %s5055_s15 }
0x1755   :  { %3452 = vrot.lane.b32.xlu1 %v3434_v43, %s5055_s15 }
0x1757   :  { %3458 = vrot.lane.b32.xlu0 %v3428_v11, %s5057_s12 }
0x1759   :  { %3460 = vrot.lane.b32.xlu1 %v3434_v43, %s5057_s12 }
0x17bd   :  { %v3447_v51 = vpop.permute.xlu0 %3446 }
0x17bf   :  { %v3449_v56 = vpop.permute.xlu1 %3448 }
0x17c0   :  { %v3454_v62 = vsel %vm3007_vm7, %v3447_v51, %v3449_v56 }
0x17c1   :  { %v3439_v57 = vpop.permute.xlu0 %3438  ;;  %v3464_v3 = vcombine.low %v3426_v49, %v3454_v62  ;;  %v3465_v7 = vcombine.high %v3426_v49, %v3454_v62 }
0x17c3   :  { %v3441_v61 = vpop.permute.xlu1 %3440  ;;  %v3472_v16 = vrot.slane %v3464_v3, %v3471_v0  ;;  %v3479_v44 = vrot.slane %v3465_v7, %v3471_v0 }
0x17c5   :  { %v3451_v63 = vpop.permute.xlu0 %3450 }
0x17c7   :  { %v3453_v5 = vpop.permute.xlu1 %3452 }
0x17c8   :  { %v3455_v8 = vsel %vm3007_vm7, %v3451_v63, %v3453_v5 }
0x17c9   :  { %v3459_v9 = vpop.permute.xlu0 %3458  ;;  %v3532_v18 = vcombine.low %v5558_v28, %v3455_v8  ;;  %v3533_v32 = vcombine.high %v5558_v28, %v3455_v8 }
0x17ca   :  { %v3480_v13 = vcombine.low %v3439_v57, %v3459_v9  ;;  %v3481_v14 = vcombine.high %v3439_v57, %v3459_v9 }
0x17cb   :  { %v3461_v20 = vpop.permute.xlu1 %3460  ;;  %v3540_v29 = vrot.slane %v3532_v18, %v3471_v0  ;;  %v3547_v30 = vrot.slane %v3533_v32, %v3471_v0 }
0x17cc   :  { %v3488_v21 = vrot.slane %v3480_v13, %v3471_v0  ;;  %v3495_v22 = vrot.slane %v3481_v14, %v3471_v0  ;;  %v3548_v23 = vcombine.low %v3441_v61, %v3461_v20  ;;  %v3549_v25 = vcombine.high %v3441_v61, %v3461_v20  ;;  %v4707_v13 = vpop.eup %4706 }
0x17ce   :  { %v3496_v26 = vcombine.low %v3472_v16, %v3488_v21  ;;  %v3497_v27 = vcombine.high %v3472_v16, %v3488_v21  ;;  %v3512_v46 = vcombine.low %v3479_v44, %v3495_v22  ;;  %v3556_v31 = vrot.slane %v3548_v23, %v3471_v0 }
0x17cf   :  { %v3513_v36 = vcombine.high %v3479_v44, %v3495_v22  ;;  %v3563_v37 = vrot.slane %v3549_v25, %v3471_v0 }
0x17d0   :  { %v5568_v33 = vrot.slane %v3497_v27, %v3503_v15  ;;  %v5570_v34 = vrot.slane %v3496_v26, %v3503_v15  ;;  %v3564_v10 = vcombine.low %v3540_v29, %v3556_v31  ;;  %v3565_v38 = vcombine.high %v3540_v29, %v3556_v31 }
0x17d1   :  { %v5576_v40 = vrot.slane %v3512_v46, %v3503_v15  ;;  %v5580_v42 = vrot.slane %v3513_v36, %v3503_v15  ;;  %v3580_v45 = vcombine.low %v3547_v30, %v3563_v37  ;;  %v3581_v50 = vcombine.high %v3547_v30, %v3563_v37 }
0x17d2   :  { %v3607_v17 = vsel %vm3600_vm9, %v5568_v33, -inf  ;;  %v3601_v39 = vsel %vm3600_vm9, %v5570_v34, -inf  ;;  %v5578_v41 = vrot.slane %v3564_v10, %v3503_v15  ;;  %v5586_v49 = vrot.slane %v3565_v38, %v3503_v15 }
0x17d3   :  { %3608 = vmax.xlane.f32.xlu1 %v3607_v17  ;;  %3602 = vmax.xlane.f32.xlu0 %v3601_v39  ;;  %v3613_v47 = vsel %vm3600_vm9, %v5576_v40, -inf  ;;  %v3619_v11 = vsel %vm3600_vm9, %v5580_v42, -inf  ;;  %v5592_v28 = vrot.slane %v3580_v45, %v3503_v15  ;;  %v3528_v2 = vcombine.high %v5570_v34, %v5026_v6 }
0x17d4   :  { %v3625_v48 = vsel %vm3600_vm9, %v5578_v41, -inf  ;;  %v3631_v53 = vsel %vm3600_vm9, %v5586_v49, -inf  ;;  %v5599_v52 = vrot.slane %v3581_v50, %v3503_v15  ;;  %v3529_v54 = vcombine.high %v5568_v33, %v5026_v6 }
0x17d5   :  { %v3637_v43 = vsel %vm3600_vm9, %v5592_v28, -inf  ;;  %v3604_v51 = vsel %vm3600_vm9, %v3528_v2, -inf  ;;  %v5608_v58 = vcombine.high %v5578_v41, %v5026_v6  ;;  %v5612_v59 = vcombine.high %v5576_v40, %v5026_v6 }
0x17d6   :  { %v3643_v56 = vsel %vm3600_vm9, %v5599_v52, -inf  ;;  %v3610_v57 = vsel %vm3600_vm9, %v3529_v54, -inf  ;;  %v5620_v63 = vcombine.high %v5586_v49, %v5026_v6  ;;  %v5624_v0 = vcombine.high %v5580_v42, %v5026_v6 }
0x17d7   :  { %3614 = vmax.xlane.f32.xlu1 %v3613_v47  ;;  %3626 = vmax.xlane.f32.xlu0 %v3625_v48  ;;  %v3628_v61 = vsel %vm3600_vm9, %v5608_v58, -inf  ;;  %v3616_v62 = vsel %vm3600_vm9, %v5612_v59, -inf  ;;  %v5632_v7 = vcombine.high %v5592_v28, %v5026_v6  ;;  %v5638_v9 = vcombine.high %v5599_v52, %v5026_v6 }
0x17d8   :  { %v3634_v3 = vsel %vm3600_vm9, %v5620_v63, -inf  ;;  %v3622_v5 = vsel %vm3600_vm9, %v5624_v0, -inf }
0x17d9   :  { %v3640_v8 = vsel %vm3600_vm9, %v5632_v7, -inf  ;;  %v3646_v12 = vsel %vm3600_vm9, %v5638_v9, -inf }
0x17db   :  { %3620 = vmax.xlane.f32.xlu1 %v3619_v11  ;;  %3632 = vmax.xlane.f32.xlu0 %v3631_v53 }
0x17df   :  { %3638 = vmax.xlane.f32.xlu0 %v3637_v43  ;;  %3605 = vmax.xlane.f32.xlu1 %v3604_v51 }
0x17e3   :  { %3644 = vmax.xlane.f32.xlu0 %v3643_v56  ;;  %3611 = vmax.xlane.f32.xlu1 %v3610_v57 }
0x17e7   :  { %3629 = vmax.xlane.f32.xlu0 %v3628_v61  ;;  %3617 = vmax.xlane.f32.xlu1 %v3616_v62 }
0x17eb   :  { %3635 = vmax.xlane.f32.xlu0 %v3634_v3  ;;  %3623 = vmax.xlane.f32.xlu1 %v3622_v5 }
0x17ef   :  { %3641 = vmax.xlane.f32.xlu0 %v3640_v8 }
0x17f3   :  { %3647 = vmax.xlane.f32.xlu0 %v3646_v12 }
0x17fc   :  { %4151 = vrot.lane.b32.xlu1 %v4707_v13, %s5051_s5 }
0x185c   :  { %v3609_v14 = vpop.xlane.xlu1 %3608  ;;  %v3603_v15 = vpop.xlane.xlu0 %3602 }
0x185d   :  { %v3651_v16 = vsub.f32 %v5568_v33, %v3609_v14  ;;  %v3649_v18 = vsub.f32 %v5570_v34, %v3603_v15 }
0x185f   :  { %v3665_v20 = vmul.f32 1.442695, %v3649_v18  ;;  %v3669_v44 = vmul.f32 1.442695, %v3651_v16 }
0x1860   :  { %v3615_v21 = vpop.xlane.xlu1 %3614  ;;  %v5645_v22 = vpop.xlane.xlu0 %3626 }
0x1861   :  { %v3653_v6 = vsub.f32 %v5576_v40, %v3615_v21  ;;  %4708 = vpow2.f32 %v3665_v20  ;;  %v3657_v14 = vsub.f32 %v5578_v41, %v5645_v22  ;;  %v5678_v20 = vld [vmem:[%s5790_s17] ss:$0 sm:$0xff] }
0x1862   :  { %4710 = vpow2.f32 %v3669_v44 }
0x1863   :  { %v3673_v23 = vmul.f32 1.442695, %v3653_v6  ;;  %v3681_v6 = vmul.f32 1.442695, %v3657_v14 }
0x1864   :  { %v3621_v24 = vpop.xlane.xlu1 %3620  ;;  %v3633_v25 = vpop.xlane.xlu0 %3632 }
0x1865   :  { %v3655_v26 = vsub.f32 %v5580_v42, %v3621_v24  ;;  %4712 = vpow2.f32 %v3673_v23  ;;  %v3659_v46 = vsub.f32 %v5586_v49, %v3633_v25 }
0x1867   :  { %v3677_v27 = vmul.f32 1.442695, %v3655_v26  ;;  %v3685_v34 = vmul.f32 1.442695, %v3659_v46 }
0x1868   :  { %v3639_v29 = vpop.xlane.xlu0 %3638  ;;  %v3606_v31 = vpop.xlane.xlu1 %3605 }
0x1869   :  { %v3650_v32 = vsub.f32 %v3528_v2, %v3606_v31  ;;  %4714 = vpow2.f32 %v3677_v27  ;;  %v3661_v35 = vsub.f32 %v5592_v28, %v3639_v29 }
0x186b   :  { %v3667_v33 = vmul.f32 1.442695, %v3650_v32  ;;  %v3689_v39 = vmul.f32 1.442695, %v3661_v35 }
0x186c   :  { %v3645_v36 = vpop.xlane.xlu0 %3644  ;;  %v3612_v37 = vpop.xlane.xlu1 %3611 }
0x186d   :  { %v3652_v10 = vsub.f32 %v3529_v54, %v3612_v37  ;;  %4716 = vpow2.f32 %v3667_v33  ;;  %v3663_v40 = vsub.f32 %v5599_v52, %v3645_v36 }
0x186e   :  { %v4709_v38 = vpop.eup %4708  ;;  %4718 = vpow2.f32 %v3685_v34 }
0x186f   :  { %v3671_v17 = vmul.f32 1.442695, %v3652_v10  ;;  %v3768_v4 = vsel %vm3600_vm9, %v4709_v38, 0.0  ;;  %v5653_v45 = vpop.eup %4710  ;;  %v3693_v49 = vmul.f32 1.442695, %v3663_v40  ;;  %v3704_v22 = vmul.f32 %v4709_v38, %v5678_v20 }
0x1870   :  { %v3630_v30 = vpop.xlane.xlu0 %3629  ;;  %v3618_v42 = vpop.xlane.xlu1 %3617  ;;  %3769 = vadd.xlane.f32.xlu1 %v3768_v4  ;;  %v3774_v50 = vsel %vm3600_vm9, %v5653_v45, 0.0  ;;  %v3706_v27 = vmul.f32 %v5653_v45, %v5678_v20 }
0x1871   :  { %v3654_v47 = vsub.f32 %v5612_v59, %v3618_v42  ;;  %4720 = vpow2.f32 %v3671_v17  ;;  %v3658_v51 = vsub.f32 %v5608_v58, %v3630_v30  ;;  %v3720_v26 = vsel %vm3600_vm9, %v3704_v22, 0.0 }
0x1872   :  { %4722 = vpow2.f32 %v3689_v39  ;;  %v5658_v53 = vpop.eup %4712  ;;  %v3726_v32 = vsel %vm3600_vm9, %v3706_v27, 0.0 }
0x1873   :  { %v3675_v48 = vmul.f32 1.442695, %v3654_v47  ;;  %v3780_v52 = vsel %vm3600_vm9, %v5658_v53, 0.0  ;;  %v3683_v60 = vmul.f32 1.442695, %v3658_v51  ;;  %v3708_v33 = vmul.f32 %v5658_v53, %v5678_v20 }
0x1874   :  { %v3624_v11 = vpop.xlane.xlu1 %3623  ;;  %v3636_v28 = vpop.xlane.xlu0 %3635  ;;  %3775 = vadd.xlane.f32.xlu1 %v3774_v50 }
0x1875   :  { %v3656_v2 = vsub.f32 %v5624_v0, %v3624_v11  ;;  %4724 = vpow2.f32 %v3675_v48  ;;  %v3660_v57 = vsub.f32 %v5620_v63, %v3636_v28  ;;  %v3732_v35 = vsel %vm3600_vm9, %v3708_v33, 0.0 }
0x1876   :  { %4726 = vpow2.f32 %v3693_v49  ;;  %v4715_v54 = vpop.eup %4714 }
0x1877   :  { %v3679_v43 = vmul.f32 1.442695, %v3656_v2  ;;  %v3786_v61 = vsel %vm3600_vm9, %v4715_v54, 0.0  ;;  %v3687_v58 = vmul.f32 1.442695, %v3660_v57  ;;  %v3710_v36 = vmul.f32 %v4715_v54, %v5678_v20 }
0x1878   :  { %3781 = vadd.xlane.f32.xlu1 %v3780_v52  ;;  %v3642_v59 = vpop.xlane.xlu0 %3641  ;;  %v3941_v2 = vsub.f32 0.0, %v5551_v55 }
0x1879   :  { %4728 = vpow2.f32 %v3679_v43  ;;  %v3662_v3 = vsub.f32 %v5632_v7, %v3642_v59  ;;  %v3738_v17 = vsel %vm3600_vm9, %v3710_v36, 0.0 }
0x187a   :  { %v4717_v56 = vpop.eup %4716  ;;  %4730 = vpow2.f32 %v3683_v60 }
0x187b   :  { %v3771_v62 = vsel %vm3600_vm9, %v4717_v56, 0.0  ;;  %v4719_v0 = vpop.eup %4718  ;;  %4732 = vpow2.f32 %v3687_v58  ;;  %v3691_v15 = vmul.f32 1.442695, %v3662_v3  ;;  %v3705_v41 = vmul.f32 %v4717_v56, %v5678_v20 }
0x187c   :  { %3787 = vadd.xlane.f32.xlu1 %v3786_v61  ;;  %3772 = vadd.xlane.f32.xlu0 %v3771_v62  ;;  %v3798_v5 = vsel %vm3600_vm9, %v4719_v0, 0.0  ;;  %v3648_v63 = vpop.xlane.xlu0 %3647  ;;  %v3714_v4 = vmul.f32 %v4719_v0, %v5678_v20  ;;  %v3944_v56 = vmul.f32 1.442695, %v3941_v2 }
0x187d   :  { %v3664_v16 = vsub.f32 %v5638_v9, %v3648_v63  ;;  %4734 = vpow2.f32 %v3691_v15  ;;  %v3723_v25 = vsel %vm3600_vm9, %v3705_v41, 0.0  ;;  %v5728_v15 = vpop.permute.xlu1 %4151 }
0x187e   :  { %v4721_v1 = vpop.eup %4720  ;;  %4736 = vpow2.f32 %v3681_v6  ;;  %v3750_v45 = vsel %vm3600_vm9, %v3714_v4, 0.0 }
0x187f   :  { %v3777_v8 = vsel %vm3600_vm9, %v4721_v1, 0.0  ;;  %v4723_v12 = vpop.eup %4722  ;;  %v3695_v9 = vmul.f32 1.442695, %v3664_v16  ;;  %v3707_v42 = vmul.f32 %v4721_v1, %v5678_v20  ;;  %v4586_v1 = vpop.f32.mrf.mxu1 }
0x1880   :  { %3799 = vadd.xlane.f32.xlu0 %v3798_v5  ;;  %3778 = vadd.xlane.f32.xlu1 %v3777_v8  ;;  %v3804_v18 = vsel %vm3600_vm9, %v4723_v12, 0.0  ;;  %v3716_v48 = vmul.f32 %v4723_v12, %v5678_v20  ;;  %v4264_v8 = vld [vmem:[%s5789_s16] ss:$0 sm:$0xff]  ;;  %s5060_s16 = smov [#allocation19]  }
0x1881   :  { %4738 = vpow2.f32 %v3695_v9  ;;  %v3729_v47 = vsel %vm3600_vm9, %v3707_v42, 0.0  ;;  %v4035_v3 = vpop.f32.mrf.mxu1 }
0x1882   :  { %v4725_v13 = vpop.eup %4724  ;;  %v3756_v50 = vsel %vm3600_vm9, %v3716_v48, 0.0  ;;  %4740 = vpow2.f32 %v3944_v56  ;;  %v4036_v12 = vadd.f32 %v4264_v8, %v4035_v3 }
0x1883   :  { %v3783_v7 = vsel %vm3600_vm9, %v4725_v13, 0.0  ;;  %v4727_v44 = vpop.eup %4726  ;;  %v3709_v49 = vmul.f32 %v4725_v13, %v5678_v20  ;;  %v4041_v13 = vadd.f32 %v4586_v1, %v4264_v8 }
0x1884   :  { %3805 = vadd.xlane.f32.xlu0 %v3804_v18  ;;  %3784 = vadd.xlane.f32.xlu1 %v3783_v7  ;;  %v3810_v23 = vsel %vm3600_vm9, %v4727_v44, 0.0  ;;  %v3718_v53 = vmul.f32 %v4727_v44, %v5678_v20 }
0x1885   :  { %v3735_v11 = vsel %vm3600_vm9, %v3709_v49, 0.0 }
0x1886   :  { %v4729_v21 = vpop.eup %4728  ;;  %v3762_v43 = vsel %vm3600_vm9, %v3718_v53, 0.0 }
0x1887   :  { %v3789_v24 = vsel %vm3600_vm9, %v4729_v21, 0.0  ;;  %v4731_v46 = vpop.eup %4730  ;;  %v3711_v28 = vmul.f32 %v4729_v21, %v5678_v20 }
0x1888   :  { %3811 = vadd.xlane.f32.xlu0 %v3810_v23  ;;  %3790 = vadd.xlane.f32.xlu1 %v3789_v24  ;;  %v4733_v29 = vpop.eup %4732  ;;  %v3795_v31 = vsel %vm3600_vm9, %v4731_v46, 0.0  ;;  %v3713_v52 = vmul.f32 %v4731_v46, %v5678_v20 }
0x1889   :  { %v3801_v34 = vsel %vm3600_vm9, %v4733_v29, 0.0  ;;  %v3741_v51 = vsel %vm3600_vm9, %v3711_v28, 0.0  ;;  %v3715_v60 = vmul.f32 %v4733_v29, %v5678_v20 }
0x188a   :  { %v4735_v37 = vpop.eup %4734  ;;  %v3747_v57 = vsel %vm3600_vm9, %v3713_v52, 0.0 }
0x188b   :  { %v4737_v10 = vpop.eup %4736  ;;  %v3807_v38 = vsel %vm3600_vm9, %v4735_v37, 0.0  ;;  %v3753_v55 = vsel %vm3600_vm9, %v3715_v60, 0.0  ;;  %v3717_v61 = vmul.f32 %v4735_v37, %v5678_v20 }
0x188c   :  { %3724 = vadd.xlane.f32.xlu0 %v3723_v25  ;;  %3721 = vadd.xlane.f32.xlu1 %v3720_v26  ;;  %v3792_v30 = vsel %vm3600_vm9, %v4737_v10, 0.0  ;;  %v3712_v54 = vmul.f32 %v4737_v10, %v5678_v20 }
0x188d   :  { %v3759_v62 = vsel %vm3600_vm9, %v3717_v61, 0.0 }
0x188e   :  { %v4739_v39 = vpop.eup %4738  ;;  %v3744_v59 = vsel %vm3600_vm9, %v3712_v54, 0.0 }
0x188f   :  { %v3813_v40 = vsel %vm3600_vm9, %v4739_v39, 0.0  ;;  %v3719_v0 = vmul.f32 %v4739_v39, %v5678_v20  ;;  %v4741_v5 = vpop.eup %4740 }
0x1890   :  { %3796 = vadd.xlane.f32.xlu0 %v3795_v31  ;;  %3727 = vadd.xlane.f32.xlu1 %v3726_v32  ;;  %v3947_v63 = vadd.f32 1.0, %v4741_v5 }
0x1891   :  { %v3765_v58 = vsel %vm3600_vm9, %v3719_v0, 0.0 }
0x1892   :  { %4742 = vrcp.f32 %v3947_v63 }
0x1894   :  { %3802 = vadd.xlane.f32.xlu0 %v3801_v34  ;;  %3733 = vadd.xlane.f32.xlu1 %v3732_v35 }
0x1898   :  { %3808 = vadd.xlane.f32.xlu0 %v3807_v38  ;;  %3739 = vadd.xlane.f32.xlu1 %v3738_v17 }
0x189c   :  { %3814 = vadd.xlane.f32.xlu0 %v3813_v40  ;;  %3793 = vadd.xlane.f32.xlu1 %v3792_v30 }
0x189f   :  { %v4743_v14 = vpop.eup %4742 }
0x18a0   :  { %3751 = vadd.xlane.f32.xlu0 %v3750_v45  ;;  %3730 = vadd.xlane.f32.xlu1 %v3729_v47 }
0x18a4   :  { %3757 = vadd.xlane.f32.xlu0 %v3756_v50  ;;  %3736 = vadd.xlane.f32.xlu1 %v3735_v11 }
0x18a8   :  { %3763 = vadd.xlane.f32.xlu0 %v3762_v43  ;;  %3742 = vadd.xlane.f32.xlu1 %v3741_v51 }
0x18ac   :  { %3748 = vadd.xlane.f32.xlu0 %v3747_v57  ;;  %3745 = vadd.xlane.f32.xlu1 %v3744_v59 }
0x18b0   :  { %3754 = vadd.xlane.f32.xlu0 %v3753_v55 }
0x18b4   :  { %3760 = vadd.xlane.f32.xlu0 %v3759_v62 }
0x18b8   :  { %3766 = vadd.xlane.f32.xlu0 %v3765_v58 }
0x18bd   :  { %4159 = vrot.lane.b32.xlu1 %v4036_v12, %s5017_s19 }
0x18c1   :  { %4161 = vrot.lane.b32.xlu1 %v4041_v13, %s5017_s19 }
0x18ce   :  { %4153 = vrot.lane.b32.xlu0 %v4743_v14, %s5051_s5  ;;  %s4179_s5 = sshll.u32 %s5060_s16, 4  ;;  %s4180_s5 = int_to_ptr.vmem [resolvable:$true] %s4179_s5 }
0x18cf   :  { %s4978_s24 = scalar_lea.vmem %s4180_s5, 256  ;;  %p4983_p9 = scmp.lt.s32.totalorder %s4180_s5, %s4180_s5 }
0x18d0   :  { %p4979_p8 = scmp.ne.s32.totalorder %s4180_s5, %s4978_s24  ;;  %p4984_p10 = scmp.lt.s32.totalorder %s4978_s24, %s4978_s24 }
0x18d2   :  { %p4985_p11 = por %p4984_p10, %p4983_p9 }
0x18d4   :  { %p4986_p12 = pnand %p4985_p11, %p4979_p8 }
0x18f9   :  { %v3770_v16 = vpop.xlane.xlu1 %3769 }
0x18fa   :  { %4744 = vrcp.f32 %v3770_v16 }
0x18fd   :  { %v3776_v18 = vpop.xlane.xlu1 %3775 }
0x1901   :  { %v3782_v7 = vpop.xlane.xlu1 %3781 }
0x1905   :  { %v3773_v20 = vpop.xlane.xlu0 %3772  ;;  %v3788_v44 = vpop.xlane.xlu1 %3787 }
0x1906   :  { %4746 = vrcp.f32 %v3773_v20 }
0x1907   :  { %4748 = vrcp.f32 %v3776_v18  ;;  %v4745_v33 = vpop.eup %4744 }
0x1909   :  { %v3800_v21 = vpop.xlane.xlu0 %3799  ;;  %v3779_v6 = vpop.xlane.xlu1 %3778 }
0x190a   :  { %4750 = vrcp.f32 %v3779_v6 }
0x190b   :  { %4752 = vrcp.f32 %v3782_v7 }
0x190d   :  { %v3806_v41 = vpop.xlane.xlu0 %3805  ;;  %v3785_v22 = vpop.xlane.xlu1 %3784 }
0x190e   :  { %4754 = vrcp.f32 %v3785_v22 }
0x190f   :  { %4756 = vrcp.f32 %v3788_v44 }
0x1911   :  { %v3812_v9 = vpop.xlane.xlu0 %3811  ;;  %v3791_v23 = vpop.xlane.xlu1 %3790 }
0x1912   :  { %4758 = vrcp.f32 %v3791_v23 }
0x1913   :  { %v4747_v34 = vpop.eup %4746 }
0x1914   :  { %v4749_v35 = vpop.eup %4748 }
0x1915   :  { %v3725_v24 = vpop.xlane.xlu0 %3724  ;;  %v3722_v25 = vpop.xlane.xlu1 %3721 }
0x1916   :  { %v3833_v36 = vmul.f32 %v4747_v34, %v3725_v24  ;;  %v3832_v37 = vmul.f32 %v4745_v33, %v3722_v25 }
0x1917   :  { %v4751_v30 = vpop.eup %4750 }
0x1918   :  { %v4069_v39 = vrot.slane %v3833_v36, %v5546_v19  ;;  %v4065_v40 = vrot.slane %v3832_v37, %v5546_v19  ;;  %v4753_v47 = vpop.eup %4752 }
0x1919   :  { %v3797_v26 = vpop.xlane.xlu0 %3796  ;;  %v3728_v27 = vpop.xlane.xlu1 %3727 }
0x191a   :  { %v3834_v10 = vmul.f32 %v4749_v35, %v3728_v27  ;;  %4760 = vrcp.f32 %v3797_v26  ;;  %v4127_v50 = vsel %vm4126_vm10, %v4069_v39, %v4065_v40 }
0x191b   :  { %v4755_v53 = vpop.eup %4754 }
0x191c   :  { %v4073_v4 = vrot.slane %v3834_v10, %v5546_v19  ;;  %v4757_v51 = vpop.eup %4756 }
0x191d   :  { %v3803_v46 = vpop.xlane.xlu0 %3802  ;;  %v3734_v29 = vpop.xlane.xlu1 %3733 }
0x191e   :  { %v3836_v49 = vmul.f32 %v4753_v47, %v3734_v29  ;;  %v4129_v28 = vsel %vm4128_vm11, %v4073_v4, %v4127_v50 }
0x191f   :  { %v4759_v60 = vpop.eup %4758 }
0x1920   :  { %v4081_v56 = vrot.slane %v3836_v49, %v5546_v19 }
0x1921   :  { %v3809_v31 = vpop.xlane.xlu0 %3808  ;;  %v3740_v32 = vpop.xlane.xlu1 %3739 }
0x1922   :  { %v3838_v57 = vmul.f32 %v4757_v51, %v3740_v32 }
0x1924   :  { %v4089_v58 = vrot.slane %v3838_v57, %v5546_v19 }
0x1925   :  { %v3815_v38 = vpop.xlane.xlu0 %3814  ;;  %v3794_v17 = vpop.xlane.xlu1 %3793 }
0x1926   :  { %4762 = vrcp.f32 %v3794_v17 }
0x1927   :  { %4764 = vrcp.f32 %v3800_v21  ;;  %v4761_v3 = vpop.eup %4760 }
0x1928   :  { %4766 = vrcp.f32 %v3803_v46 }
0x1929   :  { %v3752_v42 = vpop.xlane.xlu0 %3751  ;;  %v3731_v45 = vpop.xlane.xlu1 %3730  ;;  %4768 = vrcp.f32 %v3806_v41 }
0x192a   :  { %v3835_v48 = vmul.f32 %v4751_v30, %v3731_v45  ;;  %4770 = vrcp.f32 %v3809_v31 }
0x192b   :  { %4772 = vrcp.f32 %v3812_v9 }
0x192c   :  { %v4077_v11 = vrot.slane %v3835_v48, %v5546_v19  ;;  %4774 = vrcp.f32 %v3815_v38 }
0x192d   :  { %v3758_v2 = vpop.xlane.xlu0 %3757  ;;  %v3737_v43 = vpop.xlane.xlu1 %3736 }
0x192e   :  { %v4131_v52 = vsel %vm4130_vm12, %v4077_v11, %v4129_v28  ;;  %v3837_v54 = vmul.f32 %v4755_v53, %v3737_v43 }
0x192f   :  { %v4133_v55 = vsel %vm4132_vm13, %v4081_v56, %v4131_v52 }
0x1930   :  { %v4085_v59 = vrot.slane %v3837_v54, %v5546_v19 }
0x1931   :  { %v3764_v61 = vpop.xlane.xlu0 %3763  ;;  %v3743_v62 = vpop.xlane.xlu1 %3742 }
0x1932   :  { %v4135_v0 = vsel %vm4134_vm14, %v4085_v59, %v4133_v55  ;;  %v3839_v1 = vmul.f32 %v4759_v60, %v3743_v62 }
0x1933   :  { %v4763_v8 = vpop.eup %4762  ;;  %v4137_v13 = vsel %vm4136_vm15, %v4089_v58, %v4135_v0 }
0x1934   :  { %v4093_v5 = vrot.slane %v3839_v1, %v5546_v19  ;;  %v4765_v14 = vpop.eup %4764 }
0x1935   :  { %v3749_v12 = vpop.xlane.xlu0 %3748  ;;  %v3746_v63 = vpop.xlane.xlu1 %3745  ;;  %v3842_v20 = vmul.f32 %v4765_v14, %v3752_v42 }
0x1936   :  { %v3841_v16 = vmul.f32 %v4761_v3, %v3749_v12  ;;  %v3840_v18 = vmul.f32 %v4763_v8, %v3746_v63  ;;  %v4139_v7 = vsel %vm4138_vm0, %v4093_v5, %v4137_v13  ;;  %v4767_v41 = vpop.eup %4766 }
0x1937   :  { %v4165_v44 = vsel %vm282_vm2, %v4139_v7, %v5728_v15  ;;  %v4769_v23 = vpop.eup %4768  ;;  %v4105_v27 = vrot.slane %v3842_v20, %v5546_v19 }
0x1938   :  { %v4101_v21 = vrot.slane %v3841_v16, %v5546_v19  ;;  %v4097_v6 = vrot.slane %v3840_v18, %v5546_v19  ;;  %v3844_v46 = vmul.f32 %v4769_v23, %v3758_v2  ;;  %v4771_v31 = vpop.eup %4770 }
0x1939   :  { %v3755_v22 = vpop.xlane.xlu0 %3754  ;;  %v4160_v9 = vpop.permute.xlu1 %4159 }
0x193a   :  { %v4140_v24 = vsel %vm4126_vm10, %v4101_v21, %v4097_v6  ;;  %v3843_v25 = vmul.f32 %v4767_v41, %v3755_v22  ;;  %v4167_v26 = vsel %vm436_vm3, %v4165_v44, %v4160_v9  ;;  %v4773_v34 = vpop.eup %4772  ;;  %v4113_v37 = vrot.slane %v3844_v46, %v5546_v19 }
0x193b   :  { %v4170_v29 = vsel %vm4169_vm1, %v4167_v26, 0.0  ;;  %v4141_v32 = vsel %vm4128_vm11, %v4105_v27, %v4140_v24  ;;  %v3846_v10 = vmul.f32 %v4773_v34, %v3764_v61  ;;  %v4775_v17 = vpop.eup %4774 }
0x193c   :  { %v4109_v15 = vrot.slane %v3843_v25, %v5546_v19  ;;  %4172 = vst [vmem:[#allocation19] sm:$0xff] %v4170_v29 }
0x193d   :  { %v3761_v33 = vpop.xlane.xlu0 %3760  ;;  %v4121_v42 = vrot.slane %v3846_v10, %v5546_v19  ;;  %v4162_v50 = vpop.permute.xlu1 %4161 }
0x193e   :  { %v4142_v35 = vsel %vm4130_vm12, %v4109_v15, %v4141_v32  ;;  %v3845_v36 = vmul.f32 %v4771_v31, %v3761_v33 }
0x193f   :  { %v4143_v39 = vsel %vm4132_vm13, %v4113_v37, %v4142_v35 }
0x1940   :  { %v4117_v38 = vrot.slane %v3845_v36, %v5546_v19 }
0x1941   :  { %v3767_v40 = vpop.xlane.xlu0 %3766 }
0x1942   :  { %v4144_v30 = vsel %vm4134_vm14, %v4117_v38, %v4143_v39  ;;  %v3847_v4 = vmul.f32 %v4775_v17, %v3767_v40 }
0x1943   :  { %v4145_v48 = vsel %vm4136_vm15, %v4121_v42, %v4144_v30 }
0x1944   :  { %v4125_v45 = vrot.slane %v3847_v4, %v5546_v19 }
0x1945   :  { %v4154_v47 = vpop.permute.xlu0 %4153 }
0x1946   :  { %v4146_v49 = vsel %vm4138_vm0, %v4125_v45, %v4145_v48 }
0x1947   :  { %v4166_v11 = vsel %vm282_vm2, %v4146_v49, %v4154_v47 }
0x1948   :  { %v4168_v53 = vsel %vm436_vm3, %v4166_v11, %v4162_v50 }
0x1949   :  { %v4171_v28 = vsel %vm4169_vm1, %v4168_v53, 0.0 }
0x194a   :  { %4173 = vst [vmem:[#allocation19 + $0x8] sm:$0xff] %v4171_v28 }
0x194b   :  { %4989 = shalt.err (!%p4986_p12)
}
0x194c   :  { %4185 = dma.vmem_to_hbm [thread:$0]  %s4180_s5, 256, %s5791_s18, [#allocation4], %s5016_s28, %s5016_s28, %s5017_s19  }
0x194d   :  { %5010 = dma.done.wait [#allocation4], 256  }
0x194e   :  { %5011 = vsyncadd [#allocation4], 4294967040 }
0x194f   :  { %4189 = vsyncpa [#allocation3], 1 }
0x1950   :  { %4190 = vsyncpa [#allocation6], 1 }
0x1951   :  { %4191 = vsyncpa [#allocation9], 1 }
0x1952   :  { %4192 = vsyncpa [#allocation12], 1 }
0x1953   :  { %4193 = vsyncpa [#allocation15], 1 }
0x1954   :  { %4194 = vsyncpa [#allocation18], 1 }
0x1955   :  { %4195 = vsyncpa [#allocation4], 1 }

</bundles_post_ra>
